<compile_context>
chip_gen: v6e
topology: v6e:2x2x1
jax: 0.10.0
libtpu: 0.0.40
codegen_flags: <defaults>
</compile_context>

<pallas_src>
import functools

import jax
import jax.numpy as jnp
from jax import lax
from jax.experimental import pallas as pl
from jax.experimental.pallas import tpu as pltpu

EPS = 1e-5
NEG_INF = -1e30


def _rmsnorm(x, w):
    # x: (..., D) f32, w broadcastable to x
    ms = jnp.mean(x * x, axis=-1, keepdims=True)
    return x * lax.rsqrt(ms + EPS) * w


def _vmem_budget():
    try:
        return int(pltpu.get_tpu_info().vmem_capacity_bytes)
    except Exception:
        return 128 << 20


def _pick_tile(total, requested=None, max_tile=2048,
               candidates=(4096, 2048, 1024, 512, 256, 128, 64, 32, 16, 8)):
    if requested is not None:
        assert total % requested == 0, (total, requested)
        return requested
    for c in candidates:
        if c <= max_tile and c <= total and total % c == 0:
            return c
    return total


def _vmem_limit(block_bytes, temp_bytes):
    cap = _vmem_budget()
    est = 2 * int(block_bytes) + int(temp_bytes) + (4 << 20)  # dbl-buffer + headroom
    return int(min(max(est, 16 << 20), int(cap * 0.8)))


# ----------------------------------------------------------------------------
# Kernel 1: the full stack of TransformerBlocks.
# grid = (NB, L, KF): batch-chunk ("parallel"), layer, FFN hidden tile.
# The output block (BB, T, D) is the VMEM-resident residual stream for one
# batch chunk across all (L, KF) steps; weights stream once per (l, kf).
# ----------------------------------------------------------------------------
def transformer_blocks_kernel(x_ref, ln1_ref, wqkv_ref, wo_ref,
                              ln2_ref, wg_ref, wu_ref, wd_ref,
                              out_ref, lx2_sc, ffn_acc_sc, *, n_head):
    l = pl.program_id(1)
    kf = pl.program_id(2)
    n_kf = pl.num_programs(2)

    BB, T, D = out_ref.shape
    hd = D // n_head
    scale = 1.0 / float(hd) ** 0.5

    @pl.when(jnp.logical_and(l == 0, kf == 0))
    def _init():
        out_ref[...] = x_ref[...]

    # ---- ln1 + causal self-attention + residual + ln2 (once per layer) ----
    @pl.when(kf == 0)
    def _attention():
        x3 = out_ref[...]                                     # (BB, T, D) f32
        x = x3.reshape(BB * T, D)
        lx = _rmsnorm(x, ln1_ref[0]).astype(jnp.bfloat16)     # (BB*T, D) bf16
        qkv = jnp.dot(lx, wqkv_ref[0],
                      preferred_element_type=jnp.float32)     # (BB*T, 3D) f32
        qkv = qkv.reshape(BB, T, 3 * D)

        # causal additive mask built in-kernel (no HBM read / VMEM residency)
        q_idx = lax.broadcasted_iota(jnp.int32, (T, T), 0)
        k_idx = lax.broadcasted_iota(jnp.int32, (T, T), 1)
        mask = jnp.where(k_idx <= q_idx, 0.0, NEG_INF).astype(jnp.float32)

        wo = wo_ref[0]                                        # (D, D) bf16
        attn = jnp.zeros((BB * T, D), jnp.float32)
        # TODO(synk): flash-style KV tiling + fori_loop over heads for long T.
        for h in range(n_head):
            qh = qkv[:, :, h * hd:(h + 1) * hd].astype(jnp.bfloat16)
            kh = qkv[:, :, D + h * hd:D + (h + 1) * hd].astype(jnp.bfloat16)
            vh = qkv[:, :, 2 * D + h * hd:2 * D + (h + 1) * hd].astype(jnp.bfloat16)
            s = jnp.einsum('bqd,bkd->bqk', qh, kh,
                           preferred_element_type=jnp.float32) * scale + mask[None]
            m = jnp.max(s, axis=-1, keepdims=True)
            e = jnp.exp(s - m)
            p = e / jnp.sum(e, axis=-1, keepdims=True)        # exact softmax
            ctx_h = jnp.einsum('bqk,bkd->bqd', p.astype(jnp.bfloat16), vh,
                               preferred_element_type=jnp.float32)  # (BB,T,hd)
            # per-head output projection accumulated (no lane-dim concatenate)
            attn = attn + jnp.dot(
                ctx_h.reshape(BB * T, hd).astype(jnp.bfloat16),
                wo[h * hd:(h + 1) * hd, :],
                preferred_element_type=jnp.float32)

        x_mid = x + attn                                      # (BB*T, D)
        out_ref[...] = x_mid.reshape(BB, T, D)
        lx2_sc[...] = _rmsnorm(x_mid, ln2_ref[0]).astype(jnp.bfloat16)
        ffn_acc_sc[...] = jnp.zeros_like(ffn_acc_sc)

    # ---- SwiGLU FFN, streamed over hidden-dim tiles (every kf step) ----
    lx2 = lx2_sc[...]                                         # (BB*T, D) bf16
    g = jnp.dot(lx2, wg_ref[0], preferred_element_type=jnp.float32)
    u = jnp.dot(lx2, wu_ref[0], preferred_element_type=jnp.float32)
    silu_g = g * (1.0 / (1.0 + jnp.exp(-g)))                  # exact SiLU, exp on EUP
    ffn_acc_sc[...] += jnp.dot((silu_g * u).astype(jnp.bfloat16), wd_ref[0],
                               preferred_element_type=jnp.float32)

    @pl.when(kf == n_kf - 1)
    def _finalize():
        BB_, T_, D_ = out_ref.shape
        out_ref[...] = out_ref[...] + ffn_acc_sc[...].reshape(BB_, T_, D_)


# ----------------------------------------------------------------------------
# Kernel 2: final RMSNorm + lm_head + softmax cross-entropy.
# grid = (NR, NV): row tiles of B*T, vocab tiles. Online logsumexp + target
# logit per row tile; loss accumulated in a VMEM-resident (1, 1) output block.
# ----------------------------------------------------------------------------
def head_loss_kernel(x_ref, tgt_ref, lnf_ref, wlm_ref, blm_ref,
                     logits_ref, loss_ref, xf_sc, m_sc, l_sc, tl_sc,
                     *, seq_len, n_valid_total):
    r = pl.program_id(0)
    v = pl.program_id(1)
    nv = pl.num_programs(1)
    R, D = x_ref.shape
    TV = wlm_ref.shape[1]

    @pl.when(jnp.logical_and(r == 0, v == 0))
    def _zero_loss():
        loss_ref[...] = jnp.zeros_like(loss_ref)

    @pl.when(v == 0)
    def _row_init():
        xf_sc[...] = _rmsnorm(x_ref[...], lnf_ref[...]).astype(jnp.bfloat16)
        m_sc[...] = jnp.full_like(m_sc, NEG_INF)
        l_sc[...] = jnp.zeros_like(l_sc)
        tl_sc[...] = jnp.zeros_like(tl_sc)

    logits = jnp.dot(xf_sc[...], wlm_ref[...],
                     preferred_element_type=jnp.float32)      # (R, TV)
    logits = logits + blm_ref[...]
    logits_ref[...] = logits                                  # flat lane-dense store

    # online logsumexp across vocab tiles
    m_new = jnp.maximum(m_sc[...], jnp.max(logits, axis=-1, keepdims=True))
    l_sc[...] = (l_sc[...] * jnp.exp(m_sc[...] - m_new)
                 + jnp.sum(jnp.exp(logits - m_new), axis=-1, keepdims=True))
    m_sc[...] = m_new

    # target logit falls in exactly one vocab tile
    col = lax.broadcasted_iota(jnp.int32, (R, TV), 1) + v * TV
    onehot = col == tgt_ref[...]                              # (R, 1) broadcast
    tl_sc[...] += jnp.sum(jnp.where(onehot, logits, 0.0), axis=-1, keepdims=True)

    @pl.when(v == nv - 1)
    def _row_finalize():
        lse = m_sc[...] + jnp.log(l_sc[...])                  # (R, 1)
        per_tok = lse - tl_sc[...]                            # (R, 1)
        row_idx = lax.broadcasted_iota(jnp.int32, (R, 1), 0) + r * R
        valid = (row_idx % seq_len) != (seq_len - 1)          # drop last pos per seq
        per_tok = jnp.where(valid, per_tok, 0.0)
        loss_ref[...] += jnp.sum(per_tok, keepdims=True) / float(n_valid_total)


# ----------------------------------------------------------------------------
# Parameters / wrapper
# ----------------------------------------------------------------------------
def init_params(key, vocab_size, n_embed, block_size, n_layer, n_head):
    D, Hf = n_embed, 4 * n_embed
    ks = jax.random.split(key, 9)
    s = 0.02
    f32 = jnp.float32

    def w(k, shape):  # bf16 matmul weights for the MXU / half HBM traffic
        return (jax.random.normal(k, shape, f32) * s).astype(jnp.bfloat16)

    return {
        'tok_emb': jax.random.normal(ks[0], (vocab_size, D), f32) * s,
        'pos_emb': jax.random.normal(ks[1], (block_size, D), f32) * s,
        'ln1': jnp.ones((n_layer, 1, D), f32),
        'ln2': jnp.ones((n_layer, 1, D), f32),
        'wqkv': w(ks[2], (n_layer, D, 3 * D)),
        'wo': w(ks[3], (n_layer, D, D)),
        'wg': w(ks[4], (n_layer, D, Hf)),
        'wu': w(ks[5], (n_layer, D, Hf)),
        'wd': w(ks[6], (n_layer, Hf, D)),
        'lnf': jnp.ones((1, D), f32),
        'wlm': w(ks[7], (D, vocab_size)),
        'blm': jax.random.normal(ks[8], (1, vocab_size), f32) * s,
    }


def transformer_forward(params, idx, n_head, *, tile_hf=None, tile_v=None,
                        tile_r=None, batch_chunks=None):
    B, T = idx.shape
    L, _, D = params['ln1'].shape
    Hf = params['wg'].shape[2]
    V = params['wlm'].shape[1]
    assert D % n_head == 0
    assert T % 8 == 0, "T must be a multiple of 8 (sublane alignment)"

    budget = _vmem_budget()
    max_tile = 2048 if budget >= (96 << 20) else 1024   # generation-aware tiles
    tile_hf = _pick_tile(Hf, tile_hf, max_tile)
    tile_v = _pick_tile(V, tile_v, max_tile)
    tile_r = _pick_tile(B * T, tile_r, 1024)
    KF = Hf // tile_hf
    NV = V // tile_v
    NR = (B * T) // tile_r

    # Batch chunking: 2-way for megacore when B is large & even, else fold all
    # of B into one block so weights are streamed only L*KF times.
    if batch_chunks is None:
        batch_chunks = 2 if (B % 2 == 0 and B >= 4) else 1
    assert B % batch_chunks == 0
    NB = batch_chunks
    BB = B // NB

    # embedding gather + position add (plain-JAX glue)
    tok = params['tok_emb'][idx]                      # (B, T, D) f32
    pos = params['pos_emb'][:T]                       # (T, D)
    x = (tok + pos[None, :, :]).astype(jnp.float32)

    blk_bytes = (2 * BB * T * D * 4                           # x in + resident out
                 + 2 * D * 4                                  # ln1 + ln2
                 + D * 3 * D * 2 + D * D * 2                  # wqkv + wo (bf16)
                 + 2 * D * tile_hf * 2 + tile_hf * D * 2)     # wg + wu + wd (bf16)
    temp_bytes = (BB * T * D * (2 + 4)                        # lx2 / ffn_acc scratch
                  + BB * T * 3 * D * 4                        # qkv f32
                  + 4 * BB * T * T * 4                        # per-head scores temps
                  + 2 * BB * T * D * 4                        # attn acc + x_mid
                  + 3 * BB * T * tile_hf * 4)                 # g / u / silu*u
    vmem_blocks = _vmem_limit(blk_bytes, temp_bytes)

    x = pl.pallas_call(
        functools.partial(transformer_blocks_kernel, n_head=n_head),
        out_shape=jax.ShapeDtypeStruct((B, T, D), jnp.float32),
        grid_spec=pltpu.PrefetchScalarGridSpec(
            num_scalar_prefetch=0,
            grid=(NB, L, KF),
            in_specs=[
                pl.BlockSpec((BB, T, D), lambda b, l, k: (b, 0, 0)),
                pl.BlockSpec((1, 1, D), lambda b, l, k: (l, 0, 0)),
                pl.BlockSpec((1, D, 3 * D), lambda b, l, k: (l, 0, 0)),
                pl.BlockSpec((1, D, D), lambda b, l, k: (l, 0, 0)),
                pl.BlockSpec((1, 1, D), lambda b, l, k: (l, 0, 0)),
                pl.BlockSpec((1, D, tile_hf), lambda b, l, k: (l, 0, k)),
                pl.BlockSpec((1, D, tile_hf), lambda b, l, k: (l, 0, k)),
                pl.BlockSpec((1, tile_hf, D), lambda b, l, k: (l, k, 0)),
            ],
            out_specs=pl.BlockSpec((BB, T, D), lambda b, l, k: (b, 0, 0)),
            scratch_shapes=[pltpu.VMEM((BB * T, D), jnp.bfloat16),  # ln2(x) cache
                            pltpu.VMEM((BB * T, D), jnp.float32)],  # FFN accumulator
        ),
        input_output_aliases={0: 0},
        compiler_params=pltpu.CompilerParams(
            dimension_semantics=("parallel", "arbitrary", "arbitrary"),
            vmem_limit_bytes=vmem_blocks),
    )(x, params['ln1'], params['wqkv'], params['wo'],
      params['ln2'], params['wg'], params['wu'], params['wd'])

    # next-token targets; last column per sequence is a dummy, masked in-kernel
    targets = jnp.roll(idx, shift=-1, axis=1).reshape(B * T, 1).astype(jnp.int32)
    x_rows = x.reshape(B * T, D)

    blk_bytes_h = (tile_r * D * 4 + tile_r * 4 + D * 4
                   + D * tile_v * 2 + tile_v * 4
                   + tile_r * tile_v * 4 + 4)
    temp_bytes_h = (tile_r * D * 2 + 3 * tile_r * 4
                    + 3 * tile_r * tile_v * 4)
    vmem_head = _vmem_limit(blk_bytes_h, temp_bytes_h)

    logits_flat, loss = pl.pallas_call(
        functools.partial(head_loss_kernel, seq_len=T, n_valid_total=B * (T - 1)),
        out_shape=(jax.ShapeDtypeStruct((B * T, V), jnp.float32),
                   jax.ShapeDtypeStruct((1, 1), jnp.float32)),
        grid_spec=pltpu.PrefetchScalarGridSpec(
            num_scalar_prefetch=0,
            grid=(NR, NV),
            in_specs=[
                pl.BlockSpec((tile_r, D), lambda r, v: (r, 0)),
                pl.BlockSpec((tile_r, 1), lambda r, v: (r, 0)),
                pl.BlockSpec((1, D), lambda r, v: (0, 0)),
                pl.BlockSpec((D, tile_v), lambda r, v: (0, v)),
                pl.BlockSpec((1, tile_v), lambda r, v: (0, v)),
            ],
            out_specs=(pl.BlockSpec((tile_r, tile_v), lambda r, v: (r, v)),
                       pl.BlockSpec((1, 1), lambda r, v: (0, 0))),
            scratch_shapes=[pltpu.VMEM((tile_r, D), jnp.bfloat16),
                            pltpu.VMEM((tile_r, 1), jnp.float32),
                            pltpu.VMEM((tile_r, 1), jnp.float32),
                            pltpu.VMEM((tile_r, 1), jnp.float32)],
        ),
        compiler_params=pltpu.CompilerParams(
            dimension_semantics=("arbitrary", "arbitrary"),
            vmem_limit_bytes=vmem_head),
    )(x_rows, targets, params['lnf'], params['wlm'], params['blm'])

    # module returns logits reshaped to (B*(T-1), vocab) when targets is None
    logits = logits_flat.reshape(B, T, V)[:, :T - 1, :].reshape(B * (T - 1), V)
    return logits, loss[0, 0]


if __name__ == "__main__":
    # small test config (module defaults scaled down).  D=64 -> Hf=256 with
    # tile_hf=128 (2 FFN tiles) and V=512 with tile_v=256 (2 vocab tiles) so
    # both streaming/accumulation paths are exercised; B=2 is folded into one
    # (2, T, D) activation block (batch-fold path).
    vocab_size, n_embed, block_size_, n_layer, n_head = 512, 64, 16, 2, 4
    B, T = 2, 8

    key = jax.random.PRNGKey(0)
    pkey, ikey = jax.random.split(key)
    params = init_params(pkey, vocab_size, n_embed, block_size_, n_layer, n_head)
    idx = jax.random.randint(ikey, (B, T), 0, vocab_size, dtype=jnp.int32)

    fwd = jax.jit(functools.partial(transformer_forward, n_head=n_head,
                                    tile_hf=128, tile_v=256))
    logits, loss = fwd(params, idx)
    jax.block_until_ready((logits, loss))
    assert logits.shape == (B * (T - 1), vocab_size)
    assert loss.shape == ()
    assert bool(jnp.isfinite(loss))
    print("KERNEL_OK")
</pallas_src>

<mosaic_0001>
module attributes {stable_mosaic.version = 11 : i64} {
  func.func @head_loss_kernel(%arg0: i32, %arg1: i32, %arg2: memref<16x64xf32, #tpu.memory_space<vmem>>, %arg3: memref<16x1xi32, #tpu.memory_space<vmem>>, %arg4: memref<1x64xf32, #tpu.memory_space<vmem>>, %arg5: memref<64x256xbf16, #tpu.memory_space<vmem>>, %arg6: memref<1x256xf32, #tpu.memory_space<vmem>>, %arg7: memref<16x256xf32, #tpu.memory_space<vmem>>, %arg8: memref<1x1xf32, #tpu.memory_space<vmem>>, %arg9: memref<16x64xbf16, #tpu.memory_space<vmem>>, %arg10: memref<16x1xf32, #tpu.memory_space<vmem>>, %arg11: memref<16x1xf32, #tpu.memory_space<vmem>>, %arg12: memref<16x1xf32, #tpu.memory_space<vmem>>) attributes {dimension_semantics = [#tpu.dimension_semantics<arbitrary>, #tpu.dimension_semantics<arbitrary>], iteration_bounds = array<i64: 1, 2>, scalar_prefetch = 0 : i64, scratch_operands = 4 : i64, tpu.core_type = #tpu.core_type<tc>, window_params = [{transform_indices = @transform_0, window_bounds = array<i64: 16, 64>}, {transform_indices = @transform_1, window_bounds = array<i64: 16, 1>}, {pipeline_mode = #tpu.pipeline_mode<synchronous>, transform_indices = @transform_2, window_bounds = array<i64: 1, 64>}, {transform_indices = @transform_3, window_bounds = array<i64: 64, 256>}, {transform_indices = @transform_4, window_bounds = array<i64: 1, 256>}, {transform_indices = @transform_5, window_bounds = array<i64: 16, 256>}, {pipeline_mode = #tpu.pipeline_mode<synchronous>, transform_indices = @transform_6, window_bounds = array<i64: 1, 1>}]} {
    %c0_i32 = arith.constant 0 : i32
    %0 = arith.cmpi eq, %arg0, %c0_i32 : i32
    %c0_i32_0 = arith.constant 0 : i32
    %1 = arith.cmpi eq, %arg1, %c0_i32_0 : i32
    %2 = arith.andi %0, %1 : i1
    %3 = arith.extui %2 : i1 to i32
    %c0_i32_1 = arith.constant 0 : i32
    %4 = arith.cmpi ne, %3, %c0_i32_1 : i32
    scf.if %4 {
      %cst_32 = arith.constant 0.000000e+00 : f32
      %49 = vector.broadcast %cst_32 : f32 to vector<1x1xf32>
      %c0_33 = arith.constant 0 : index
      %c0_34 = arith.constant 0 : index
      %50 = vector.load %arg8[%c0_33, %c0_34] : memref<1x1xf32, #tpu.memory_space<vmem>>, vector<1x1xf32>
      tpu.vector_store %arg8[%c0_33, %c0_34], %49 {strides = array<i32>} : memref<1x1xf32, #tpu.memory_space<vmem>>, vector<1x1xf32>,
    } else {
    }
    %c0_i32_2 = arith.constant 0 : i32
    %5 = arith.cmpi eq, %arg1, %c0_i32_2 : i32
    %6 = arith.extui %5 : i1 to i32
    %c0_i32_3 = arith.constant 0 : i32
    %7 = arith.cmpi ne, %6, %c0_i32_3 : i32
    scf.if %7 {
      %c0_32 = arith.constant 0 : index
      %c0_33 = arith.constant 0 : index
      %49 = vector.load %arg2[%c0_32, %c0_33] : memref<16x64xf32, #tpu.memory_space<vmem>>, vector<16x64xf32>
      %c0_34 = arith.constant 0 : index
      %c0_35 = arith.constant 0 : index
      %50 = vector.load %arg4[%c0_34, %c0_35] : memref<1x64xf32, #tpu.memory_space<vmem>>, vector<1x64xf32>
      %51 = arith.mulf %49, %49 : vector<16x64xf32>
      %cst_36 = arith.constant dense<0.000000e+00> : vector<16xf32>
      %52 = vector.multi_reduction <add>, %51, %cst_36 [1] : vector<16x64xf32> to vector<16xf32>
      %53 = vector.shape_cast %52 : vector<16xf32> to vector<16x1xf32>
      %cst_37 = arith.constant 6.400000e+01 : f32
      %54 = vector.broadcast %cst_37 : f32 to vector<16x1xf32>
      %55 = arith.divf %53, %54 : vector<16x1xf32>
      %cst_38 = arith.constant 9.99999974E-6 : f32
      %56 = vector.broadcast %cst_38 : f32 to vector<16x1xf32>
      %57 = arith.addf %55, %56 : vector<16x1xf32>
      %58 = math.rsqrt %57 : vector<16x1xf32>
      %59 = vector.broadcast %58 : vector<16x1xf32> to vector<16x64xf32>
      %60 = arith.mulf %49, %59 : vector<16x64xf32>
      %61 = vector.broadcast %50 : vector<1x64xf32> to vector<16x64xf32>
      %62 = arith.mulf %60, %61 : vector<16x64xf32>
      %63 = arith.truncf %62 : vector<16x64xf32> to vector<16x64xbf16>
      %c0_39 = arith.constant 0 : index
      %c0_40 = arith.constant 0 : index
      %64 = vector.load %arg9[%c0_39, %c0_40] : memref<16x64xbf16, #tpu.memory_space<vmem>>, vector<16x64xbf16>
      tpu.vector_store %arg9[%c0_39, %c0_40], %63 {strides = array<i32>} : memref<16x64xbf16, #tpu.memory_space<vmem>>, vector<16x64xbf16>,
      %cst_41 = arith.constant -1.000000e+30 : f32
      %65 = vector.broadcast %cst_41 : f32 to vector<16x1xf32>
      %c0_42 = arith.constant 0 : index
      %c0_43 = arith.constant 0 : index
      %66 = vector.load %arg10[%c0_42, %c0_43] : memref<16x1xf32, #tpu.memory_space<vmem>>, vector<16x1xf32>
      tpu.vector_store %arg10[%c0_42, %c0_43], %65 {strides = array<i32>} : memref<16x1xf32, #tpu.memory_space<vmem>>, vector<16x1xf32>,
      %cst_44 = arith.constant 0.000000e+00 : f32
      %67 = vector.broadcast %cst_44 : f32 to vector<16x1xf32>
      %c0_45 = arith.constant 0 : index
      %c0_46 = arith.constant 0 : index
      %68 = vector.load %arg11[%c0_45, %c0_46] : memref<16x1xf32, #tpu.memory_space<vmem>>, vector<16x1xf32>
      tpu.vector_store %arg11[%c0_45, %c0_46], %67 {strides = array<i32>} : memref<16x1xf32, #tpu.memory_space<vmem>>, vector<16x1xf32>,
      %cst_47 = arith.constant 0.000000e+00 : f32
      %69 = vector.broadcast %cst_47 : f32 to vector<16x1xf32>
      %c0_48 = arith.constant 0 : index
      %c0_49 = arith.constant 0 : index
      %70 = vector.load %arg12[%c0_48, %c0_49] : memref<16x1xf32, #tpu.memory_space<vmem>>, vector<16x1xf32>
      tpu.vector_store %arg12[%c0_48, %c0_49], %69 {strides = array<i32>} : memref<16x1xf32, #tpu.memory_space<vmem>>, vector<16x1xf32>,
    } else {
    }
    %c0 = arith.constant 0 : index
    %c0_4 = arith.constant 0 : index
    %8 = vector.load %arg9[%c0, %c0_4] : memref<16x64xbf16, #tpu.memory_space<vmem>>, vector<16x64xbf16>
    %c0_5 = arith.constant 0 : index
    %c0_6 = arith.constant 0 : index
    %9 = vector.load %arg5[%c0_5, %c0_6] : memref<64x256xbf16, #tpu.memory_space<vmem>>, vector<64x256xbf16>
    %cst = arith.constant dense<0.000000e+00> : vector<16x256xf32>
    %10 = tpu.matmul %8, %9, %cst {dimension_numbers = #tpu.dot_dimension_numbers<[1], [0], [0], [1], [0, 0, 1, 1], [], []>} : vector<16x64xbf16>, vector<64x256xbf16>, vector<16x256xf32> -> vector<16x256xf32>
    %c0_7 = arith.constant 0 : index
    %c0_8 = arith.constant 0 : index
    %11 = vector.load %arg6[%c0_7, %c0_8] : memref<1x256xf32, #tpu.memory_space<vmem>>, vector<1x256xf32>
    %12 = vector.broadcast %11 : vector<1x256xf32> to vector<16x256xf32>
    %13 = arith.addf %10, %12 : vector<16x256xf32>
    %c0_9 = arith.constant 0 : index
    %c0_10 = arith.constant 0 : index
    %14 = vector.load %arg7[%c0_9, %c0_10] : memref<16x256xf32, #tpu.memory_space<vmem>>, vector<16x256xf32>
    tpu.vector_store %arg7[%c0_9, %c0_10], %13 {strides = array<i32>} : memref<16x256xf32, #tpu.memory_space<vmem>>, vector<16x256xf32>,
    %c0_11 = arith.constant 0 : index
    %c0_12 = arith.constant 0 : index
    %15 = vector.load %arg10[%c0_11, %c0_12] : memref<16x1xf32, #tpu.memory_space<vmem>>, vector<16x1xf32>
    %cst_13 = arith.constant dense<0xFF800000> : vector<16xf32>
    %16 = vector.multi_reduction <maximumf>, %13, %cst_13 [1] : vector<16x256xf32> to vector<16xf32>
    %17 = vector.shape_cast %16 : vector<16xf32> to vector<16x1xf32>
    %18 = arith.maximumf %15, %17 : vector<16x1xf32>
    %c0_14 = arith.constant 0 : index
    %c0_15 = arith.constant 0 : index
    %19 = vector.load %arg11[%c0_14, %c0_15] : memref<16x1xf32, #tpu.memory_space<vmem>>, vector<16x1xf32>
    %c0_16 = arith.constant 0 : index
    %c0_17 = arith.constant 0 : index
    %20 = vector.load %arg10[%c0_16, %c0_17] : memref<16x1xf32, #tpu.memory_space<vmem>>, vector<16x1xf32>
    %21 = arith.subf %20, %18 : vector<16x1xf32>
    %22 = math.exp %21 : vector<16x1xf32>
    %23 = arith.mulf %19, %22 : vector<16x1xf32>
    %24 = vector.broadcast %18 : vector<16x1xf32> to vector<16x256xf32>
    %25 = arith.subf %13, %24 : vector<16x256xf32>
    %26 = math.exp %25 : vector<16x256xf32>
    %cst_18 = arith.constant dense<0.000000e+00> : vector<16xf32>
    %27 = vector.multi_reduction <add>, %26, %cst_18 [1] : vector<16x256xf32> to vector<16xf32>
    %28 = vector.shape_cast %27 : vector<16xf32> to vector<16x1xf32>
    %29 = arith.addf %23, %28 : vector<16x1xf32>
    %c0_19 = arith.constant 0 : index
    %c0_20 = arith.constant 0 : index
    %30 = vector.load %arg11[%c0_19, %c0_20] : memref<16x1xf32, #tpu.memory_space<vmem>>, vector<16x1xf32>
    tpu.vector_store %arg11[%c0_19, %c0_20], %29 {strides = array<i32>} : memref<16x1xf32, #tpu.memory_space<vmem>>, vector<16x1xf32>,
    %c0_21 = arith.constant 0 : index
    %c0_22 = arith.constant 0 : index
    %31 = vector.load %arg10[%c0_21, %c0_22] : memref<16x1xf32, #tpu.memory_space<vmem>>, vector<16x1xf32>
    tpu.vector_store %arg10[%c0_21, %c0_22], %18 {strides = array<i32>} : memref<16x1xf32, #tpu.memory_space<vmem>>, vector<16x1xf32>,
    %32 = tpu.iota {dimensions = array<i32: 1>} : vector<16x256xi32>
    %c256_i32 = arith.constant 256 : i32
    %33 = arith.muli %arg1, %c256_i32 : i32
    %34 = vector.broadcast %33 : i32 to vector<16x256xi32>
    %35 = arith.addi %32, %34 : vector<16x256xi32>
    %c0_23 = arith.constant 0 : index
    %c0_24 = arith.constant 0 : index
    %36 = vector.load %arg3[%c0_23, %c0_24] : memref<16x1xi32, #tpu.memory_space<vmem>>, vector<16x1xi32>
    %37 = vector.broadcast %36 : vector<16x1xi32> to vector<16x256xi32>
    %38 = arith.cmpi eq, %35, %37 : vector<16x256xi32>
    %c0_25 = arith.constant 0 : index
    %c0_26 = arith.constant 0 : index
    %39 = vector.load %arg12[%c0_25, %c0_26] : memref<16x1xf32, #tpu.memory_space<vmem>>, vector<16x1xf32>
    %cst_27 = arith.constant 0.000000e+00 : f32
    %40 = vector.broadcast %cst_27 : f32 to vector<16x256xf32>
    %41 = arith.select %38, %13, %40 : vector<16x256xi1>, vector<16x256xf32>
    %cst_28 = arith.constant dense<0.000000e+00> : vector<16xf32>
    %42 = vector.multi_reduction <add>, %41, %cst_28 [1] : vector<16x256xf32> to vector<16xf32>
    %43 = vector.shape_cast %42 : vector<16xf32> to vector<16x1xf32>
    %44 = arith.addf %39, %43 : vector<16x1xf32>
    %c0_29 = arith.constant 0 : index
    %c0_30 = arith.constant 0 : index
    %45 = vector.load %arg12[%c0_29, %c0_30] : memref<16x1xf32, #tpu.memory_space<vmem>>, vector<16x1xf32>
    tpu.vector_store %arg12[%c0_29, %c0_30], %44 {strides = array<i32>} : memref<16x1xf32, #tpu.memory_space<vmem>>, vector<16x1xf32>,
    %c1_i32 = arith.constant 1 : i32
    %46 = arith.cmpi eq, %arg1, %c1_i32 : i32
    %47 = arith.extui %46 : i1 to i32
    %c0_i32_31 = arith.constant 0 : i32
    %48 = arith.cmpi ne, %47, %c0_i32_31 : i32
    scf.if %48 {
      %c0_32 = arith.constant 0 : index
      %c0_33 = arith.constant 0 : index
      %49 = vector.load %arg10[%c0_32, %c0_33] : memref<16x1xf32, #tpu.memory_space<vmem>>, vector<16x1xf32>
      %c0_34 = arith.constant 0 : index
      %c0_35 = arith.constant 0 : index
      %50 = vector.load %arg11[%c0_34, %c0_35] : memref<16x1xf32, #tpu.memory_space<vmem>>, vector<16x1xf32>
      %51 = math.log %50 : vector<16x1xf32>
      %52 = arith.addf %49, %51 : vector<16x1xf32>
      %c0_36 = arith.constant 0 : index
      %c0_37 = arith.constant 0 : index
      %53 = vector.load %arg12[%c0_36, %c0_37] : memref<16x1xf32, #tpu.memory_space<vmem>>, vector<16x1xf32>
      %54 = arith.subf %52, %53 : vector<16x1xf32>
      %55 = tpu.iota {dimensions = array<i32: 0>} : vector<16x1xi32>
      %c16_i32 = arith.constant 16 : i32
      %56 = arith.muli %arg0, %c16_i32 : i32
      %57 = vector.broadcast %56 : i32 to vector<16x1xi32>
      %58 = arith.addi %55, %57 : vector<16x1xi32>
      %c8_i32 = arith.constant 8 : i32
      %c0_i32_38 = arith.constant 0 : i32
      %59 = arith.cmpi eq, %c8_i32, %c0_i32_38 : i32
      %c1_i32_39 = arith.constant 1 : i32
      %60 = arith.select %59, %c1_i32_39, %c8_i32 : i32
      %61 = vector.broadcast %60 : i32 to vector<16x1xi32>
      %62 = arith.remsi %58, %61 : vector<16x1xi32>
      %c0_i32_40 = arith.constant 0 : i32
      %63 = vector.broadcast %c0_i32_40 : i32 to vector<16x1xi32>
      %64 = arith.cmpi ne, %62, %63 : vector<16x1xi32>
      %c0_i32_41 = arith.constant 0 : i32
      %65 = vector.broadcast %c0_i32_41 : i32 to vector<16x1xi32>
      %66 = arith.cmpi slt, %62, %65 : vector<16x1xi32>
      %c0_i32_42 = arith.constant 0 : i32
      %67 = arith.cmpi slt, %60, %c0_i32_42 : i32
      %68 = vector.broadcast %67 : i1 to vector<16x1xi1>
      %69 = vector.broadcast %68 : vector<16x1xi1> to vector<16x1xi1>
      %70 = arith.xori %66, %69 : vector<16x1xi1>
      %71 = arith.andi %70, %64 : vector<16x1xi1>
      %72 = vector.broadcast %60 : i32 to vector<16x1xi32>
      %73 = arith.addi %62, %72 : vector<16x1xi32>
      %74 = arith.select %71, %73, %62 : vector<16x1xi1>, vector<16x1xi32>
      %c7_i32 = arith.constant 7 : i32
      %75 = vector.broadcast %c7_i32 : i32 to vector<16x1xi32>
      %76 = arith.cmpi ne, %74, %75 : vector<16x1xi32>
      %cst_43 = arith.constant 0.000000e+00 : f32
      %77 = vector.broadcast %cst_43 : f32 to vector<16x1xf32>
      %78 = arith.select %76, %54, %77 : vector<16x1xi1>, vector<16x1xf32>
      %c0_44 = arith.constant 0 : index
      %c0_45 = arith.constant 0 : index
      %79 = vector.load %arg8[%c0_44, %c0_45] : memref<1x1xf32, #tpu.memory_space<vmem>>, vector<1x1xf32>
      %80 = vector.shape_cast %78 : vector<16x1xf32> to vector<1x16x1xf32>
      %cst_46 = arith.constant dense<0.000000e+00> : vector<1xf32>
      %81 = vector.multi_reduction <add>, %80, %cst_46 [1, 2] : vector<1x16x1xf32> to vector<1xf32>
      %82 = vector.shape_cast %81 : vector<1xf32> to vector<1x1x1xf32>
      %83 = vector.extract %82[0, 0, 0] : f32 from vector<1x1x1xf32>
      %84 = vector.broadcast %83 : f32 to vector<1x1xf32>
      %cst_47 = arith.constant 1.400000e+01 : f32
      %85 = vector.broadcast %cst_47 : f32 to vector<1x1xf32>
      %86 = arith.divf %84, %85 : vector<1x1xf32>
      %87 = arith.addf %79, %86 : vector<1x1xf32>
      %c0_48 = arith.constant 0 : index
      %c0_49 = arith.constant 0 : index
      %88 = vector.load %arg8[%c0_48, %c0_49] : memref<1x1xf32, #tpu.memory_space<vmem>>, vector<1x1xf32>
      tpu.vector_store %arg8[%c0_48, %c0_49], %87 {strides = array<i32>} : memref<1x1xf32, #tpu.memory_space<vmem>>, vector<1x1xf32>,
    } else {
    }
    return
  }
  func.func @transform_0(%arg0: i32, %arg1: i32) -> (i32, i32) {
    %c0_i32 = arith.constant 0 : i32
    %c0_i32_0 = arith.constant 0 : i32
    return %arg0, %c0_i32 : i32, i32
  }
  func.func @transform_1(%arg0: i32, %arg1: i32) -> (i32, i32) {
    %c0_i32 = arith.constant 0 : i32
    %c0_i32_0 = arith.constant 0 : i32
    return %arg0, %c0_i32 : i32, i32
  }
  func.func @transform_2(%arg0: i32, %arg1: i32) -> (i32, i32) {
    %c0_i32 = arith.constant 0 : i32
    %c0_i32_0 = arith.constant 0 : i32
    %c0_i32_1 = arith.constant 0 : i32
    return %c0_i32, %c0_i32_0 : i32, i32
  }
  func.func @transform_3(%arg0: i32, %arg1: i32) -> (i32, i32) {
    %c0_i32 = arith.constant 0 : i32
    %c0_i32_0 = arith.constant 0 : i32
    return %c0_i32, %arg1 : i32, i32
  }
  func.func @transform_4(%arg0: i32, %arg1: i32) -> (i32, i32) {
    %c0_i32 = arith.constant 0 : i32
    %c0_i32_0 = arith.constant 0 : i32
    return %c0_i32, %arg1 : i32, i32
  }
  func.func @transform_5(%arg0: i32, %arg1: i32) -> (i32, i32) {
    %c0_i32 = arith.constant 0 : i32
    return %arg0, %arg1 : i32, i32
  }
  func.func @transform_6(%arg0: i32, %arg1: i32) -> (i32, i32) {
    %c0_i32 = arith.constant 0 : i32
    %c0_i32_0 = arith.constant 0 : i32
    %c0_i32_1 = arith.constant 0 : i32
    return %c0_i32, %c0_i32_0 : i32, i32
  }
}

module attributes {stable_mosaic.version = 11 : i64} {
  func.func @transformer_blocks_kernel(%arg0: i32, %arg1: i32, %arg2: i32, %arg3: memref<2x8x64xf32, #tpu.memory_space<vmem>>, %arg4: memref<1x1x64xf32, #tpu.memory_space<vmem>>, %arg5: memref<1x64x192xbf16, #tpu.memory_space<vmem>>, %arg6: memref<1x64x64xbf16, #tpu.memory_space<vmem>>, %arg7: memref<1x1x64xf32, #tpu.memory_space<vmem>>, %arg8: memref<1x64x128xbf16, #tpu.memory_space<vmem>>, %arg9: memref<1x64x128xbf16, #tpu.memory_space<vmem>>, %arg10: memref<1x128x64xbf16, #tpu.memory_space<vmem>>, %arg11: memref<2x8x64xf32, #tpu.memory_space<vmem>>, %arg12: memref<16x64xbf16, #tpu.memory_space<vmem>>, %arg13: memref<16x64xf32, #tpu.memory_space<vmem>>) attributes {dimension_semantics = [#tpu.dimension_semantics<parallel>, #tpu.dimension_semantics<arbitrary>, #tpu.dimension_semantics<arbitrary>], iteration_bounds = array<i64: 1, 2, 2>, scalar_prefetch = 0 : i64, scratch_operands = 2 : i64, tpu.core_type = #tpu.core_type<tc>, window_params = [{transform_indices = @transform_0, window_bounds = array<i64: 2, 8, 64>}, {transform_indices = @transform_1, window_bounds = array<i64: 1, 1, 64>}, {transform_indices = @transform_2, window_bounds = array<i64: 1, 64, 192>}, {transform_indices = @transform_3, window_bounds = array<i64: 1, 64, 64>}, {transform_indices = @transform_4, window_bounds = array<i64: 1, 1, 64>}, {transform_indices = @transform_5, window_bounds = array<i64: 1, 64, 128>}, {transform_indices = @transform_6, window_bounds = array<i64: 1, 64, 128>}, {transform_indices = @transform_7, window_bounds = array<i64: 1, 128, 64>}, {transform_indices = @transform_8, window_bounds = array<i64: 2, 8, 64>}]} {
    %c0_i32 = arith.constant 0 : i32
    %0 = arith.cmpi eq, %arg1, %c0_i32 : i32
    %c0_i32_0 = arith.constant 0 : i32
    %1 = arith.cmpi eq, %arg2, %c0_i32_0 : i32
    %2 = arith.andi %0, %1 : i1
    %3 = arith.extui %2 : i1 to i32
    %c0_i32_1 = arith.constant 0 : i32
    %4 = arith.cmpi ne, %3, %c0_i32_1 : i32
    scf.if %4 {
      %c0_24 = arith.constant 0 : index
      %c0_25 = arith.constant 0 : index
      %c0_26 = arith.constant 0 : index
      %34 = vector.load %arg3[%c0_24, %c0_25, %c0_26] : memref<2x8x64xf32, #tpu.memory_space<vmem>>, vector<2x8x64xf32>
      %c0_27 = arith.constant 0 : index
      %c0_28 = arith.constant 0 : index
      %c0_29 = arith.constant 0 : index
      %35 = vector.load %arg11[%c0_27, %c0_28, %c0_29] : memref<2x8x64xf32, #tpu.memory_space<vmem>>, vector<2x8x64xf32>
      tpu.vector_store %arg11[%c0_27, %c0_28, %c0_29], %34 {strides = array<i32>} : memref<2x8x64xf32, #tpu.memory_space<vmem>>, vector<2x8x64xf32>,
    } else {
    }
    %c0_i32_2 = arith.constant 0 : i32
    %5 = arith.cmpi eq, %arg2, %c0_i32_2 : i32
    %6 = arith.extui %5 : i1 to i32
    %c0_i32_3 = arith.constant 0 : i32
    %7 = arith.cmpi ne, %6, %c0_i32_3 : i32
    scf.if %7 {
      %c0_24 = arith.constant 0 : index
      %c0_25 = arith.constant 0 : index
      %c0_26 = arith.constant 0 : index
      %34 = vector.load %arg11[%c0_24, %c0_25, %c0_26] : memref<2x8x64xf32, #tpu.memory_space<vmem>>, vector<2x8x64xf32>
      %35 = vector.shape_cast %34 : vector<2x8x64xf32> to vector<16x64xf32>
      %c0_27 = arith.constant 0 : index
      %c0_28 = arith.constant 0 : index
      %c0_29 = arith.constant 0 : index
      %36 = vector.load %arg4[%c0_27, %c0_28, %c0_29] : memref<1x1x64xf32, #tpu.memory_space<vmem>>, vector<1x1x64xf32>
      %37 = vector.shape_cast %36 : vector<1x1x64xf32> to vector<1x64xf32>
      %38 = arith.mulf %35, %35 : vector<16x64xf32>
      %cst_30 = arith.constant dense<0.000000e+00> : vector<16xf32>
      %39 = vector.multi_reduction <add>, %38, %cst_30 [1] : vector<16x64xf32> to vector<16xf32>
      %40 = vector.shape_cast %39 : vector<16xf32> to vector<16x1xf32>
      %cst_31 = arith.constant 6.400000e+01 : f32
      %41 = vector.broadcast %cst_31 : f32 to vector<16x1xf32>
      %42 = arith.divf %40, %41 : vector<16x1xf32>
      %cst_32 = arith.constant 9.99999974E-6 : f32
      %43 = vector.broadcast %cst_32 : f32 to vector<16x1xf32>
      %44 = arith.addf %42, %43 : vector<16x1xf32>
      %45 = math.rsqrt %44 : vector<16x1xf32>
      %46 = vector.broadcast %45 : vector<16x1xf32> to vector<16x64xf32>
      %47 = arith.mulf %35, %46 : vector<16x64xf32>
      %48 = vector.broadcast %37 : vector<1x64xf32> to vector<16x64xf32>
      %49 = arith.mulf %47, %48 : vector<16x64xf32>
      %50 = arith.truncf %49 : vector<16x64xf32> to vector<16x64xbf16>
      %c0_33 = arith.constant 0 : index
      %c0_34 = arith.constant 0 : index
      %c0_35 = arith.constant 0 : index
      %51 = vector.load %arg5[%c0_33, %c0_34, %c0_35] : memref<1x64x192xbf16, #tpu.memory_space<vmem>>, vector<1x64x192xbf16>
      %52 = vector.shape_cast %51 : vector<1x64x192xbf16> to vector<64x192xbf16>
      %cst_36 = arith.constant dense<0.000000e+00> : vector<16x192xf32>
      %53 = tpu.matmul %50, %52, %cst_36 {dimension_numbers = #tpu.dot_dimension_numbers<[1], [0], [0], [1], [0, 0, 1, 1], [], []>} : vector<16x64xbf16>, vector<64x192xbf16>, vector<16x192xf32> -> vector<16x192xf32>
      %54 = vector.shape_cast %53 : vector<16x192xf32> to vector<2x8x192xf32>
      %55 = tpu.iota {dimensions = array<i32: 0>} : vector<8x8xi32>
      %56 = tpu.iota {dimensions = array<i32: 1>} : vector<8x8xi32>
      %57 = arith.cmpi sle, %56, %55 : vector<8x8xi32>
      %cst_37 = arith.constant 0.000000e+00 : f32
      %cst_38 = arith.constant -1.000000e+30 : f32
      %58 = vector.broadcast %cst_37 : f32 to vector<8x8xf32>
      %59 = vector.broadcast %cst_38 : f32 to vector<8x8xf32>
      %60 = arith.select %57, %58, %59 : vector<8x8xi1>, vector<8x8xf32>
      %c0_39 = arith.constant 0 : index
      %c0_40 = arith.constant 0 : index
      %c0_41 = arith.constant 0 : index
      %61 = vector.load %arg6[%c0_39, %c0_40, %c0_41] : memref<1x64x64xbf16, #tpu.memory_space<vmem>>, vector<1x64x64xbf16>
      %62 = vector.shape_cast %61 : vector<1x64x64xbf16> to vector<64x64xbf16>
      %cst_42 = arith.constant 0.000000e+00 : f32
      %63 = vector.broadcast %cst_42 : f32 to vector<16x64xf32>
      %64 = vector.extract_strided_slice %54 {offsets = [0, 0, 0], sizes = [2, 8, 16], strides = [1, 1, 1]} : vector<2x8x192xf32> to vector<2x8x16xf32>
      %65 = arith.truncf %64 : vector<2x8x16xf32> to vector<2x8x16xbf16>
      %66 = vector.extract_strided_slice %54 {offsets = [0, 0, 64], sizes = [2, 8, 16], strides = [1, 1, 1]} : vector<2x8x192xf32> to vector<2x8x16xf32>
      %67 = arith.truncf %66 : vector<2x8x16xf32> to vector<2x8x16xbf16>
      %68 = vector.extract_strided_slice %54 {offsets = [0, 0, 128], sizes = [2, 8, 16], strides = [1, 1, 1]} : vector<2x8x192xf32> to vector<2x8x16xf32>
      %69 = arith.truncf %68 : vector<2x8x16xf32> to vector<2x8x16xbf16>
      "tpu.trace_start"() <{level = 10 : i32, message = "bqd,bkd->bqk"}> : () -> ()
      %cst_43 = arith.constant dense<0.000000e+00> : vector<2x8x8xf32>
      %70 = tpu.matmul %65, %67, %cst_43 {dimension_numbers = #tpu.dot_dimension_numbers<[2], [2], [1], [1], [0, 0, 0, 1, 1, 1], [0], [0]>} : vector<2x8x16xbf16>, vector<2x8x16xbf16>, vector<2x8x8xf32> -> vector<2x8x8xf32>
      "tpu.trace_stop"() : () -> ()
      %cst_44 = arith.constant 2.500000e-01 : f32
      %71 = vector.broadcast %cst_44 : f32 to vector<2x8x8xf32>
      %72 = arith.mulf %70, %71 : vector<2x8x8xf32>
      %73 = vector.shape_cast %60 : vector<8x8xf32> to vector<1x8x8xf32>
      %74 = vector.broadcast %73 : vector<1x8x8xf32> to vector<2x8x8xf32>
      %75 = arith.addf %72, %74 : vector<2x8x8xf32>
      %cst_45 = arith.constant dense<0xFF800000> : vector<2x8xf32>
      %76 = vector.multi_reduction <maximumf>, %75, %cst_45 [2] : vector<2x8x8xf32> to vector<2x8xf32>
      %77 = vector.shape_cast %76 : vector<2x8xf32> to vector<2x8x1xf32>
      %78 = vector.broadcast %77 : vector<2x8x1xf32> to vector<2x8x8xf32>
      %79 = arith.subf %75, %78 : vector<2x8x8xf32>
      %80 = math.exp %79 : vector<2x8x8xf32>
      %cst_46 = arith.constant dense<0.000000e+00> : vector<2x8xf32>
      %81 = vector.multi_reduction <add>, %80, %cst_46 [2] : vector<2x8x8xf32> to vector<2x8xf32>
      %82 = vector.shape_cast %81 : vector<2x8xf32> to vector<2x8x1xf32>
      %83 = vector.broadcast %82 : vector<2x8x1xf32> to vector<2x8x8xf32>
      %84 = arith.divf %80, %83 : vector<2x8x8xf32>
      %85 = arith.truncf %84 : vector<2x8x8xf32> to vector<2x8x8xbf16>
      "tpu.trace_start"() <{level = 10 : i32, message = "bqk,bkd->bqd"}> : () -> ()
      %cst_47 = arith.constant dense<0.000000e+00> : vector<2x8x16xf32>
      %86 = tpu.matmul %85, %69, %cst_47 {dimension_numbers = #tpu.dot_dimension_numbers<[2], [1], [1], [2], [0, 0, 0, 1, 1, 2], [0], [0]>} : vector<2x8x8xbf16>, vector<2x8x16xbf16>, vector<2x8x16xf32> -> vector<2x8x16xf32>
      "tpu.trace_stop"() : () -> ()
      %87 = vector.shape_cast %86 : vector<2x8x16xf32> to vector<16x16xf32>
      %88 = arith.truncf %87 : vector<16x16xf32> to vector<16x16xbf16>
      %89 = vector.extract_strided_slice %62 {offsets = [0, 0], sizes = [16, 64], strides = [1, 1]} : vector<64x64xbf16> to vector<16x64xbf16>
      %cst_48 = arith.constant dense<0.000000e+00> : vector<16x64xf32>
      %90 = tpu.matmul %88, %89, %cst_48 {dimension_numbers = #tpu.dot_dimension_numbers<[1], [0], [0], [1], [0, 0, 1, 1], [], []>} : vector<16x16xbf16>, vector<16x64xbf16>, vector<16x64xf32> -> vector<16x64xf32>
      %91 = arith.addf %63, %90 : vector<16x64xf32>
      %92 = vector.extract_strided_slice %54 {offsets = [0, 0, 16], sizes = [2, 8, 16], strides = [1, 1, 1]} : vector<2x8x192xf32> to vector<2x8x16xf32>
      %93 = arith.truncf %92 : vector<2x8x16xf32> to vector<2x8x16xbf16>
      %94 = vector.extract_strided_slice %54 {offsets = [0, 0, 80], sizes = [2, 8, 16], strides = [1, 1, 1]} : vector<2x8x192xf32> to vector<2x8x16xf32>
      %95 = arith.truncf %94 : vector<2x8x16xf32> to vector<2x8x16xbf16>
      %96 = vector.extract_strided_slice %54 {offsets = [0, 0, 144], sizes = [2, 8, 16], strides = [1, 1, 1]} : vector<2x8x192xf32> to vector<2x8x16xf32>
      %97 = arith.truncf %96 : vector<2x8x16xf32> to vector<2x8x16xbf16>
      "tpu.trace_start"() <{level = 10 : i32, message = "bqd,bkd->bqk"}> : () -> ()
      %cst_49 = arith.constant dense<0.000000e+00> : vector<2x8x8xf32>
      %98 = tpu.matmul %93, %95, %cst_49 {dimension_numbers = #tpu.dot_dimension_numbers<[2], [2], [1], [1], [0, 0, 0, 1, 1, 1], [0], [0]>} : vector<2x8x16xbf16>, vector<2x8x16xbf16>, vector<2x8x8xf32> -> vector<2x8x8xf32>
      "tpu.trace_stop"() : () -> ()
      %cst_50 = arith.constant 2.500000e-01 : f32
      %99 = vector.broadcast %cst_50 : f32 to vector<2x8x8xf32>
      %100 = arith.mulf %98, %99 : vector<2x8x8xf32>
      %101 = vector.shape_cast %60 : vector<8x8xf32> to vector<1x8x8xf32>
      %102 = vector.broadcast %101 : vector<1x8x8xf32> to vector<2x8x8xf32>
      %103 = arith.addf %100, %102 : vector<2x8x8xf32>
      %cst_51 = arith.constant dense<0xFF800000> : vector<2x8xf32>
      %104 = vector.multi_reduction <maximumf>, %103, %cst_51 [2] : vector<2x8x8xf32> to vector<2x8xf32>
      %105 = vector.shape_cast %104 : vector<2x8xf32> to vector<2x8x1xf32>
      %106 = vector.broadcast %105 : vector<2x8x1xf32> to vector<2x8x8xf32>
      %107 = arith.subf %103, %106 : vector<2x8x8xf32>
      %108 = math.exp %107 : vector<2x8x8xf32>
      %cst_52 = arith.constant dense<0.000000e+00> : vector<2x8xf32>
      %109 = vector.multi_reduction <add>, %108, %cst_52 [2] : vector<2x8x8xf32> to vector<2x8xf32>
      %110 = vector.shape_cast %109 : vector<2x8xf32> to vector<2x8x1xf32>
      %111 = vector.broadcast %110 : vector<2x8x1xf32> to vector<2x8x8xf32>
      %112 = arith.divf %108, %111 : vector<2x8x8xf32>
      %113 = arith.truncf %112 : vector<2x8x8xf32> to vector<2x8x8xbf16>
      "tpu.trace_start"() <{level = 10 : i32, message = "bqk,bkd->bqd"}> : () -> ()
      %cst_53 = arith.constant dense<0.000000e+00> : vector<2x8x16xf32>
      %114 = tpu.matmul %113, %97, %cst_53 {dimension_numbers = #tpu.dot_dimension_numbers<[2], [1], [1], [2], [0, 0, 0, 1, 1, 2], [0], [0]>} : vector<2x8x8xbf16>, vector<2x8x16xbf16>, vector<2x8x16xf32> -> vector<2x8x16xf32>
      "tpu.trace_stop"() : () -> ()
      %115 = vector.shape_cast %114 : vector<2x8x16xf32> to vector<16x16xf32>
      %116 = arith.truncf %115 : vector<16x16xf32> to vector<16x16xbf16>
      %117 = vector.extract_strided_slice %62 {offsets = [16, 0], sizes = [16, 64], strides = [1, 1]} : vector<64x64xbf16> to vector<16x64xbf16>
      %cst_54 = arith.constant dense<0.000000e+00> : vector<16x64xf32>
      %118 = tpu.matmul %116, %117, %cst_54 {dimension_numbers = #tpu.dot_dimension_numbers<[1], [0], [0], [1], [0, 0, 1, 1], [], []>} : vector<16x16xbf16>, vector<16x64xbf16>, vector<16x64xf32> -> vector<16x64xf32>
      %119 = arith.addf %91, %118 : vector<16x64xf32>
      %120 = vector.extract_strided_slice %54 {offsets = [0, 0, 32], sizes = [2, 8, 16], strides = [1, 1, 1]} : vector<2x8x192xf32> to vector<2x8x16xf32>
      %121 = arith.truncf %120 : vector<2x8x16xf32> to vector<2x8x16xbf16>
      %122 = vector.extract_strided_slice %54 {offsets = [0, 0, 96], sizes = [2, 8, 16], strides = [1, 1, 1]} : vector<2x8x192xf32> to vector<2x8x16xf32>
      %123 = arith.truncf %122 : vector<2x8x16xf32> to vector<2x8x16xbf16>
      %124 = vector.extract_strided_slice %54 {offsets = [0, 0, 160], sizes = [2, 8, 16], strides = [1, 1, 1]} : vector<2x8x192xf32> to vector<2x8x16xf32>
      %125 = arith.truncf %124 : vector<2x8x16xf32> to vector<2x8x16xbf16>
      "tpu.trace_start"() <{level = 10 : i32, message = "bqd,bkd->bqk"}> : () -> ()
      %cst_55 = arith.constant dense<0.000000e+00> : vector<2x8x8xf32>
      %126 = tpu.matmul %121, %123, %cst_55 {dimension_numbers = #tpu.dot_dimension_numbers<[2], [2], [1], [1], [0, 0, 0, 1, 1, 1], [0], [0]>} : vector<2x8x16xbf16>, vector<2x8x16xbf16>, vector<2x8x8xf32> -> vector<2x8x8xf32>
      "tpu.trace_stop"() : () -> ()
      %cst_56 = arith.constant 2.500000e-01 : f32
      %127 = vector.broadcast %cst_56 : f32 to vector<2x8x8xf32>
      %128 = arith.mulf %126, %127 : vector<2x8x8xf32>
      %129 = vector.shape_cast %60 : vector<8x8xf32> to vector<1x8x8xf32>
      %130 = vector.broadcast %129 : vector<1x8x8xf32> to vector<2x8x8xf32>
      %131 = arith.addf %128, %130 : vector<2x8x8xf32>
      %cst_57 = arith.constant dense<0xFF800000> : vector<2x8xf32>
      %132 = vector.multi_reduction <maximumf>, %131, %cst_57 [2] : vector<2x8x8xf32> to vector<2x8xf32>
      %133 = vector.shape_cast %132 : vector<2x8xf32> to vector<2x8x1xf32>
      %134 = vector.broadcast %133 : vector<2x8x1xf32> to vector<2x8x8xf32>
      %135 = arith.subf %131, %134 : vector<2x8x8xf32>
      %136 = math.exp %135 : vector<2x8x8xf32>
      %cst_58 = arith.constant dense<0.000000e+00> : vector<2x8xf32>
      %137 = vector.multi_reduction <add>, %136, %cst_58 [2] : vector<2x8x8xf32> to vector<2x8xf32>
      %138 = vector.shape_cast %137 : vector<2x8xf32> to vector<2x8x1xf32>
      %139 = vector.broadcast %138 : vector<2x8x1xf32> to vector<2x8x8xf32>
      %140 = arith.divf %136, %139 : vector<2x8x8xf32>
      %141 = arith.truncf %140 : vector<2x8x8xf32> to vector<2x8x8xbf16>
      "tpu.trace_start"() <{level = 10 : i32, message = "bqk,bkd->bqd"}> : () -> ()
      %cst_59 = arith.constant dense<0.000000e+00> : vector<2x8x16xf32>
      %142 = tpu.matmul %141, %125, %cst_59 {dimension_numbers = #tpu.dot_dimension_numbers<[2], [1], [1], [2], [0, 0, 0, 1, 1, 2], [0], [0]>} : vector<2x8x8xbf16>, vector<2x8x16xbf16>, vector<2x8x16xf32> -> vector<2x8x16xf32>
      "tpu.trace_stop"() : () -> ()
      %143 = vector.shape_cast %142 : vector<2x8x16xf32> to vector<16x16xf32>
      %144 = arith.truncf %143 : vector<16x16xf32> to vector<16x16xbf16>
      %145 = vector.extract_strided_slice %62 {offsets = [32, 0], sizes = [16, 64], strides = [1, 1]} : vector<64x64xbf16> to vector<16x64xbf16>
      %cst_60 = arith.constant dense<0.000000e+00> : vector<16x64xf32>
      %146 = tpu.matmul %144, %145, %cst_60 {dimension_numbers = #tpu.dot_dimension_numbers<[1], [0], [0], [1], [0, 0, 1, 1], [], []>} : vector<16x16xbf16>, vector<16x64xbf16>, vector<16x64xf32> -> vector<16x64xf32>
      %147 = arith.addf %119, %146 : vector<16x64xf32>
      %148 = vector.extract_strided_slice %54 {offsets = [0, 0, 48], sizes = [2, 8, 16], strides = [1, 1, 1]} : vector<2x8x192xf32> to vector<2x8x16xf32>
      %149 = arith.truncf %148 : vector<2x8x16xf32> to vector<2x8x16xbf16>
      %150 = vector.extract_strided_slice %54 {offsets = [0, 0, 112], sizes = [2, 8, 16], strides = [1, 1, 1]} : vector<2x8x192xf32> to vector<2x8x16xf32>
      %151 = arith.truncf %150 : vector<2x8x16xf32> to vector<2x8x16xbf16>
      %152 = vector.extract_strided_slice %54 {offsets = [0, 0, 176], sizes = [2, 8, 16], strides = [1, 1, 1]} : vector<2x8x192xf32> to vector<2x8x16xf32>
      %153 = arith.truncf %152 : vector<2x8x16xf32> to vector<2x8x16xbf16>
      "tpu.trace_start"() <{level = 10 : i32, message = "bqd,bkd->bqk"}> : () -> ()
      %cst_61 = arith.constant dense<0.000000e+00> : vector<2x8x8xf32>
      %154 = tpu.matmul %149, %151, %cst_61 {dimension_numbers = #tpu.dot_dimension_numbers<[2], [2], [1], [1], [0, 0, 0, 1, 1, 1], [0], [0]>} : vector<2x8x16xbf16>, vector<2x8x16xbf16>, vector<2x8x8xf32> -> vector<2x8x8xf32>
      "tpu.trace_stop"() : () -> ()
      %cst_62 = arith.constant 2.500000e-01 : f32
      %155 = vector.broadcast %cst_62 : f32 to vector<2x8x8xf32>
      %156 = arith.mulf %154, %155 : vector<2x8x8xf32>
      %157 = vector.shape_cast %60 : vector<8x8xf32> to vector<1x8x8xf32>
      %158 = vector.broadcast %157 : vector<1x8x8xf32> to vector<2x8x8xf32>
      %159 = arith.addf %156, %158 : vector<2x8x8xf32>
      %cst_63 = arith.constant dense<0xFF800000> : vector<2x8xf32>
      %160 = vector.multi_reduction <maximumf>, %159, %cst_63 [2] : vector<2x8x8xf32> to vector<2x8xf32>
      %161 = vector.shape_cast %160 : vector<2x8xf32> to vector<2x8x1xf32>
      %162 = vector.broadcast %161 : vector<2x8x1xf32> to vector<2x8x8xf32>
      %163 = arith.subf %159, %162 : vector<2x8x8xf32>
      %164 = math.exp %163 : vector<2x8x8xf32>
      %cst_64 = arith.constant dense<0.000000e+00> : vector<2x8xf32>
      %165 = vector.multi_reduction <add>, %164, %cst_64 [2] : vector<2x8x8xf32> to vector<2x8xf32>
      %166 = vector.shape_cast %165 : vector<2x8xf32> to vector<2x8x1xf32>
      %167 = vector.broadcast %166 : vector<2x8x1xf32> to vector<2x8x8xf32>
      %168 = arith.divf %164, %167 : vector<2x8x8xf32>
      %169 = arith.truncf %168 : vector<2x8x8xf32> to vector<2x8x8xbf16>
      "tpu.trace_start"() <{level = 10 : i32, message = "bqk,bkd->bqd"}> : () -> ()
      %cst_65 = arith.constant dense<0.000000e+00> : vector<2x8x16xf32>
      %170 = tpu.matmul %169, %153, %cst_65 {dimension_numbers = #tpu.dot_dimension_numbers<[2], [1], [1], [2], [0, 0, 0, 1, 1, 2], [0], [0]>} : vector<2x8x8xbf16>, vector<2x8x16xbf16>, vector<2x8x16xf32> -> vector<2x8x16xf32>
      "tpu.trace_stop"() : () -> ()
      %171 = vector.shape_cast %170 : vector<2x8x16xf32> to vector<16x16xf32>
      %172 = arith.truncf %171 : vector<16x16xf32> to vector<16x16xbf16>
      %173 = vector.extract_strided_slice %62 {offsets = [48, 0], sizes = [16, 64], strides = [1, 1]} : vector<64x64xbf16> to vector<16x64xbf16>
      %cst_66 = arith.constant dense<0.000000e+00> : vector<16x64xf32>
      %174 = tpu.matmul %172, %173, %cst_66 {dimension_numbers = #tpu.dot_dimension_numbers<[1], [0], [0], [1], [0, 0, 1, 1], [], []>} : vector<16x16xbf16>, vector<16x64xbf16>, vector<16x64xf32> -> vector<16x64xf32>
      %175 = arith.addf %147, %174 : vector<16x64xf32>
      %176 = arith.addf %35, %175 : vector<16x64xf32>
      %177 = vector.shape_cast %176 : vector<16x64xf32> to vector<2x8x64xf32>
      %c0_67 = arith.constant 0 : index
      %c0_68 = arith.constant 0 : index
      %c0_69 = arith.constant 0 : index
      %178 = vector.load %arg11[%c0_67, %c0_68, %c0_69] : memref<2x8x64xf32, #tpu.memory_space<vmem>>, vector<2x8x64xf32>
      tpu.vector_store %arg11[%c0_67, %c0_68, %c0_69], %177 {strides = array<i32>} : memref<2x8x64xf32, #tpu.memory_space<vmem>>, vector<2x8x64xf32>,
      %c0_70 = arith.constant 0 : index
      %c0_71 = arith.constant 0 : index
      %c0_72 = arith.constant 0 : index
      %179 = vector.load %arg7[%c0_70, %c0_71, %c0_72] : memref<1x1x64xf32, #tpu.memory_space<vmem>>, vector<1x1x64xf32>
      %180 = vector.shape_cast %179 : vector<1x1x64xf32> to vector<1x64xf32>
      %181 = arith.mulf %176, %176 : vector<16x64xf32>
      %cst_73 = arith.constant dense<0.000000e+00> : vector<16xf32>
      %182 = vector.multi_reduction <add>, %181, %cst_73 [1] : vector<16x64xf32> to vector<16xf32>
      %183 = vector.shape_cast %182 : vector<16xf32> to vector<16x1xf32>
      %cst_74 = arith.constant 6.400000e+01 : f32
      %184 = vector.broadcast %cst_74 : f32 to vector<16x1xf32>
      %185 = arith.divf %183, %184 : vector<16x1xf32>
      %cst_75 = arith.constant 9.99999974E-6 : f32
      %186 = vector.broadcast %cst_75 : f32 to vector<16x1xf32>
      %187 = arith.addf %185, %186 : vector<16x1xf32>
      %188 = math.rsqrt %187 : vector<16x1xf32>
      %189 = vector.broadcast %188 : vector<16x1xf32> to vector<16x64xf32>
      %190 = arith.mulf %176, %189 : vector<16x64xf32>
      %191 = vector.broadcast %180 : vector<1x64xf32> to vector<16x64xf32>
      %192 = arith.mulf %190, %191 : vector<16x64xf32>
      %193 = arith.truncf %192 : vector<16x64xf32> to vector<16x64xbf16>
      %c0_76 = arith.constant 0 : index
      %c0_77 = arith.constant 0 : index
      %194 = vector.load %arg12[%c0_76, %c0_77] : memref<16x64xbf16, #tpu.memory_space<vmem>>, vector<16x64xbf16>
      tpu.vector_store %arg12[%c0_76, %c0_77], %193 {strides = array<i32>} : memref<16x64xbf16, #tpu.memory_space<vmem>>, vector<16x64xbf16>,
      %cst_78 = arith.constant 0.000000e+00 : f32
      %195 = vector.broadcast %cst_78 : f32 to vector<16x64xf32>
      %c0_79 = arith.constant 0 : index
      %c0_80 = arith.constant 0 : index
      %196 = vector.load %arg13[%c0_79, %c0_80] : memref<16x64xf32, #tpu.memory_space<vmem>>, vector<16x64xf32>
      tpu.vector_store %arg13[%c0_79, %c0_80], %195 {strides = array<i32>} : memref<16x64xf32, #tpu.memory_space<vmem>>, vector<16x64xf32>,
    } else {
    }
    %c0 = arith.constant 0 : index
    %c0_4 = arith.constant 0 : index
    %8 = vector.load %arg12[%c0, %c0_4] : memref<16x64xbf16, #tpu.memory_space<vmem>>, vector<16x64xbf16>
    %c0_5 = arith.constant 0 : index
    %c0_6 = arith.constant 0 : index
    %c0_7 = arith.constant 0 : index
    %9 = vector.load %arg8[%c0_5, %c0_6, %c0_7] : memref<1x64x128xbf16, #tpu.memory_space<vmem>>, vector<1x64x128xbf16>
    %10 = vector.shape_cast %9 : vector<1x64x128xbf16> to vector<64x128xbf16>
    %cst = arith.constant dense<0.000000e+00> : vector<16x128xf32>
    %11 = tpu.matmul %8, %10, %cst {dimension_numbers = #tpu.dot_dimension_numbers<[1], [0], [0], [1], [0, 0, 1, 1], [], []>} : vector<16x64xbf16>, vector<64x128xbf16>, vector<16x128xf32> -> vector<16x128xf32>
    %c0_8 = arith.constant 0 : index
    %c0_9 = arith.constant 0 : index
    %c0_10 = arith.constant 0 : index
    %12 = vector.load %arg9[%c0_8, %c0_9, %c0_10] : memref<1x64x128xbf16, #tpu.memory_space<vmem>>, vector<1x64x128xbf16>
    %13 = vector.shape_cast %12 : vector<1x64x128xbf16> to vector<64x128xbf16>
    %cst_11 = arith.constant dense<0.000000e+00> : vector<16x128xf32>
    %14 = tpu.matmul %8, %13, %cst_11 {dimension_numbers = #tpu.dot_dimension_numbers<[1], [0], [0], [1], [0, 0, 1, 1], [], []>} : vector<16x64xbf16>, vector<64x128xbf16>, vector<16x128xf32> -> vector<16x128xf32>
    %cst_12 = arith.constant 0.000000e+00 : f32
    %15 = vector.broadcast %cst_12 : f32 to vector<16x128xf32>
    %16 = arith.subf %15, %11 : vector<16x128xf32>
    %17 = math.exp %16 : vector<16x128xf32>
    %cst_13 = arith.constant 1.000000e+00 : f32
    %18 = vector.broadcast %cst_13 : f32 to vector<16x128xf32>
    %19 = arith.addf %18, %17 : vector<16x128xf32>
    %cst_14 = arith.constant 1.000000e+00 : f32
    %20 = vector.broadcast %cst_14 : f32 to vector<16x128xf32>
    %21 = arith.divf %20, %19 : vector<16x128xf32>
    %22 = arith.mulf %11, %21 : vector<16x128xf32>
    %c0_15 = arith.constant 0 : index
    %c0_16 = arith.constant 0 : index
    %23 = vector.load %arg13[%c0_15, %c0_16] : memref<16x64xf32, #tpu.memory_space<vmem>>, vector<16x64xf32>
    %24 = arith.mulf %22, %14 : vector<16x128xf32>
    %25 = arith.truncf %24 : vector<16x128xf32> to vector<16x128xbf16>
    %c0_17 = arith.constant 0 : index
    %c0_18 = arith.constant 0 : index
    %c0_19 = arith.constant 0 : index
    %26 = vector.load %arg10[%c0_17, %c0_18, %c0_19] : memref<1x128x64xbf16, #tpu.memory_space<vmem>>, vector<1x128x64xbf16>
    %27 = vector.shape_cast %26 : vector<1x128x64xbf16> to vector<128x64xbf16>
    %cst_20 = arith.constant dense<0.000000e+00> : vector<16x64xf32>
    %28 = tpu.matmul %25, %27, %cst_20 {dimension_numbers = #tpu.dot_dimension_numbers<[1], [0], [0], [1], [0, 0, 1, 1], [], []>} : vector<16x128xbf16>, vector<128x64xbf16>, vector<16x64xf32> -> vector<16x64xf32>
    %29 = arith.addf %23, %28 : vector<16x64xf32>
    %c0_21 = arith.constant 0 : index
    %c0_22 = arith.constant 0 : index
    %30 = vector.load %arg13[%c0_21, %c0_22] : memref<16x64xf32, #tpu.memory_space<vmem>>, vector<16x64xf32>
    tpu.vector_store %arg13[%c0_21, %c0_22], %29 {strides = array<i32>} : memref<16x64xf32, #tpu.memory_space<vmem>>, vector<16x64xf32>,
    %c1_i32 = arith.constant 1 : i32
    %31 = arith.cmpi eq, %arg2, %c1_i32 : i32
    %32 = arith.extui %31 : i1 to i32
    %c0_i32_23 = arith.constant 0 : i32
    %33 = arith.cmpi ne, %32, %c0_i32_23 : i32
    scf.if %33 {
      %c0_24 = arith.constant 0 : index
      %c0_25 = arith.constant 0 : index
      %c0_26 = arith.constant 0 : index
      %34 = vector.load %arg11[%c0_24, %c0_25, %c0_26] : memref<2x8x64xf32, #tpu.memory_space<vmem>>, vector<2x8x64xf32>
      %c0_27 = arith.constant 0 : index
      %c0_28 = arith.constant 0 : index
      %35 = vector.load %arg13[%c0_27, %c0_28] : memref<16x64xf32, #tpu.memory_space<vmem>>, vector<16x64xf32>
      %36 = vector.shape_cast %35 : vector<16x64xf32> to vector<2x8x64xf32>
      %37 = arith.addf %34, %36 : vector<2x8x64xf32>
      %c0_29 = arith.constant 0 : index
      %c0_30 = arith.constant 0 : index
      %c0_31 = arith.constant 0 : index
      %38 = vector.load %arg11[%c0_29, %c0_30, %c0_31] : memref<2x8x64xf32, #tpu.memory_space<vmem>>, vector<2x8x64xf32>
      tpu.vector_store %arg11[%c0_29, %c0_30, %c0_31], %37 {strides = array<i32>} : memref<2x8x64xf32, #tpu.memory_space<vmem>>, vector<2x8x64xf32>,
    } else {
    }
    return
  }
  func.func @transform_0(%arg0: i32, %arg1: i32, %arg2: i32) -> (i32, i32, i32) {
    %c0_i32 = arith.constant 0 : i32
    %c0_i32_0 = arith.constant 0 : i32
    %c0_i32_1 = arith.constant 0 : i32
    return %arg0, %c0_i32, %c0_i32_0 : i32, i32, i32
  }
  func.func @transform_1(%arg0: i32, %arg1: i32, %arg2: i32) -> (i32, i32, i32) {
    %c0_i32 = arith.constant 0 : i32
    %c0_i32_0 = arith.constant 0 : i32
    %c0_i32_1 = arith.constant 0 : i32
    return %arg1, %c0_i32, %c0_i32_0 : i32, i32, i32
  }
  func.func @transform_2(%arg0: i32, %arg1: i32, %arg2: i32) -> (i32, i32, i32) {
    %c0_i32 = arith.constant 0 : i32
    %c0_i32_0 = arith.constant 0 : i32
    %c0_i32_1 = arith.constant 0 : i32
    return %arg1, %c0_i32, %c0_i32_0 : i32, i32, i32
  }
  func.func @transform_3(%arg0: i32, %arg1: i32, %arg2: i32) -> (i32, i32, i32) {
    %c0_i32 = arith.constant 0 : i32
    %c0_i32_0 = arith.constant 0 : i32
    %c0_i32_1 = arith.constant 0 : i32
    return %arg1, %c0_i32, %c0_i32_0 : i32, i32, i32
  }
  func.func @transform_4(%arg0: i32, %arg1: i32, %arg2: i32) -> (i32, i32, i32) {
    %c0_i32 = arith.constant 0 : i32
    %c0_i32_0 = arith.constant 0 : i32
    %c0_i32_1 = arith.constant 0 : i32
    return %arg1, %c0_i32, %c0_i32_0 : i32, i32, i32
  }
  func.func @transform_5(%arg0: i32, %arg1: i32, %arg2: i32) -> (i32, i32, i32) {
    %c0_i32 = arith.constant 0 : i32
    %c0_i32_0 = arith.constant 0 : i32
    return %arg1, %c0_i32, %arg2 : i32, i32, i32
  }
  func.func @transform_6(%arg0: i32, %arg1: i32, %arg2: i32) -> (i32, i32, i32) {
    %c0_i32 = arith.constant 0 : i32
    %c0_i32_0 = arith.constant 0 : i32
    return %arg1, %c0_i32, %arg2 : i32, i32, i32
  }
  func.func @transform_7(%arg0: i32, %arg1: i32, %arg2: i32) -> (i32, i32, i32) {
    %c0_i32 = arith.constant 0 : i32
    %c0_i32_0 = arith.constant 0 : i32
    return %arg1, %arg2, %c0_i32 : i32, i32, i32
  }
  func.func @transform_8(%arg0: i32, %arg1: i32, %arg2: i32) -> (i32, i32, i32) {
    %c0_i32 = arith.constant 0 : i32
    %c0_i32_0 = arith.constant 0 : i32
    %c0_i32_1 = arith.constant 0 : i32
    return %arg0, %c0_i32, %c0_i32_0 : i32, i32, i32
  }
}

</mosaic_0001>

<bundles_post_ra>
// kernel: transformer_forward.3
= control target key start
LH: loop header
LB: loop body
LE: loop exit
PB: predicated region body
PF: predicated region fallthrough
CT: control target
= control target key end

     0   :  { %12 = vsyncpa [#allocation9], 0  ;;  %s1133_s21 = smov 0   ;;  %s1135_s22 = smov 0   ;;  %s1293_s0 = inlined_call_operand.vmem [shape: f32[16,64], index: 0, kind: input, shape index: {}]   ;;  %s1294_s1 = inlined_call_operand.vmem [shape: s32[16,1], index: 1, kind: input, shape index: {}]   ;;  %s1295_s2 = inlined_call_operand.vmem [shape: f32[1,64], index: 2, kind: input, shape index: {}]   ;;  %s1296_s3 = inlined_call_operand.vmem [shape: bf16[64,512], index: 3, kind: input, shape index: {}]   ;;  %s1297_s4 = inlined_call_operand.vmem [shape: f32[1,512], index: 4, kind: input, shape index: {}]   ;;  %s1298_s5 = inlined_call_operand.vmem [shape: f32[16,512], index: 5, kind: output, shape index: {0}]   ;;  %s1299_s6 = inlined_call_operand.hbm [shape: f32[1,1], index: 6, kind: output, shape index: {1}]  }
   0x1   :  { %s1137_s23 = smov 0   ;;  %s1139_s24 = smov 0  }
   0x2   :  { %s1141_s25 = smov 0  }
   0x3 LB: > { %s27_s26 = sadd.s32 1, %s1087_s24  ;;  %s895_s27 = sadd.s32 4294967295, %s1091_s25   ;;  %s1091_s25 = sphi %s1141_s25, %s18_s25   ;;  %s1087_s24 = sphi %s1139_s24, %s1305_s24   ;;  %s1083_s23 = sphi %s1137_s23, %s1304_s23   ;;  %s1079_s22 = sphi %s1135_s22, %s1303_s22   ;;  %s1075_s21 = sphi %s1133_s21, %s1302_s21  }
   0x4   : > { %p28_p0 = scmp.ge.s32.totalorder %s27_s26, 2  ;;  %p117_p1 = scmp.ne.s32.totalorder %s1079_s22, %s1075_s21 }
   0x5   : > { %p118_p2 = scmp.eq.s32.totalorder %s1091_s25, 0  ;;  %p1165_p4 = scmp.eq.s32.totalorder %s895_s27, 1 }
   0x6   : > { %s1307_s26 = smov (%p28_p0, %s27_s26), 0  ;;  %s110_s30 = sadd.s32 1, %s1079_s22 }
   0x7   : > { %p119_p3 = por %p118_p2, %p117_p1  ;;  %s107_s29 = ssub.s32 %s1087_s24, %s1307_s26 }
   0x8   : > { %p108_p5 = scmp.eq.s32.totalorder %s107_s29, 0  ;;  %p1174_p6 = por %p1165_p4, %p117_p1 }
   0x9   : > { %p900_p7 = scmp.ge.s32.totalorder %s1091_s25, 2 }
   0xa   : > { %s1179_s8 = scalar_select %p108_p5, %s1079_s22, %s110_s30  }
   0xb   : > { %239 = sbr.rel (%p900_p7) target bundleno = 24 (0x18), region = 28 }
  0x10   : > { %242 = sbr.rel (!%p119_p3) target bundleno = 24 (0x18), region = 32  ;;  %s244_s9 = sand.u32 (%p119_p3), 1, %s1079_s22  }
  0x11   : > { %s932_s10 = sshll.u32 (%p119_p3), %s1087_s24, 3  ;;  %s901_s11 = sshll.u32 (%p119_p3), %s244_s9, 6 }
  0x12   : > { %s249_s14 = scalar_lea.vmem (%p119_p3), %s1296_s3, %s932_s10  ;;  %s246_s15 = scalar_lea.vmem (%p119_p3), [#allocation6], %s901_s11 }
  0x13   : > { %v292_v0 = vld [vmem:[%s249_s14] sm:$0xff] (%p119_p3)  ;;  %v294_v1 = vld [vmem:[%s249_s14 + $0x10] sm:$0xff] (%p119_p3) }
  0x14   : > { %v296_v2 = vld [vmem:[%s249_s14 + $0x20] sm:$0xff] (%p119_p3)  ;;  %293 = vst [vmem:[%s246_s15] sm:$0xff] (%p119_p3), %v292_v0  ;;  %295 = vst [vmem:[%s246_s15 + $0x8] sm:$0xff] (%p119_p3), %v294_v1  ;;  %v298_v3 = vld [vmem:[%s249_s14 + $0x30] sm:$0xff] (%p119_p3) }
  0x15   : > { %297 = vst [vmem:[%s246_s15 + $0x10] sm:$0xff] %v296_v2  ;;  %v300_v4 = vld [vmem:[%s249_s14 + $0x40] sm:$0xff]  ;;  %v302_v5 = vld [vmem:[%s249_s14 + $0x50] sm:$0xff]  ;;  %299 = vst [vmem:[%s246_s15 + $0x18] sm:$0xff] %v298_v3 }
  0x16   : > { %301 = vst [vmem:[%s246_s15 + $0x20] sm:$0xff] %v300_v4  ;;  %303 = vst [vmem:[%s246_s15 + $0x28] sm:$0xff] %v302_v5  ;;  %v304_v6 = vld [vmem:[%s249_s14 + $0x60] sm:$0xff]  ;;  %v306_v7 = vld [vmem:[%s249_s14 + $0x70] sm:$0xff] }
  0x17   : > { %305 = vst [vmem:[%s246_s15 + $0x30] sm:$0xff] %v304_v6  ;;  %307 = vst [vmem:[%s246_s15 + $0x38] sm:$0xff] %v306_v7 }
  0x18 PF: > { %p904_p8 = scmp.ge.s32.totalorder %s1091_s25, 1  ;;  %p320_p9 = scmp.lt.s32.totalorder %s1091_s25, 3 }
  0x1a   : > { %p321_p10 = pnand %p904_p8, %p320_p9 }
  0x1b   : > { %s327_s16 = sand.u32 (!%p321_p10), 1, %s1075_s21   ;;  %s907_s17 = sshll.u32 (!%p321_p10), %s1083_s23, 1 }
  0x1c   : > { %324 = sbr.rel (%p321_p10) target bundleno = 1120 (0x460), region = 74  ;;  %s905_s18 = sshll.u32 (!%p321_p10), %s327_s16, 6 }
  0x1d   : > { %s906_s19 = sshll.u32 (!%p321_p10), %s327_s16, 5  ;;  %p383_p11 = scmp.lt.s32.totalorder (!%p321_p10), %s907_s17, 3 }
  0x1e   : > { %p391_p12 = scmp.eq.s32.totalorder (!%p321_p10), %s1083_s23, 0  ;;  %s1198_s30 = scalar_lea.vmem (!%p321_p10), [#allocation6], %s905_s18 }
  0x1f   : > { %s1200_s9 = scalar_lea.vmem (!%p321_p10), [#allocation7], %s906_s19 }
  0x21   : > { %s1309_s17 = smov (!%p383_p11, %s907_s17), 3  ;;  %395 = sbr.rel (!%p391_p12) target bundleno = 38 (0x26), region = 82  ;;  %vm396_vm0 = vcmask (%p391_p12), 0   ;;  %v1093_v8 = vmov (%p391_p12), 0.0  }
  0x22   : > { %s385_s29 = scalar_lea.vmem %s1297_s4, %s1309_s17  ;;  %397 = vst.msk [vmem:[#allocation8] sm:$0x1] (%p391_p12), %vm396_vm0, %v1093_v8 }
  0x26 PF: > { %p909_p13 = scmp.ne.s32.totalorder %s1083_s23, 0 }
  0x28   : > { %400 = sbr.rel (%p909_p13) target bundleno = 216 (0xd8), region = 86 }
  0x2d   : > { %v401_v9 = vld [vmem:[%s1293_s0] sm:$0xff]  ;;  %vm406_vm1 = vcmask 523264   ;;  %v402_v10 = vld [vmem:[%s1293_s0 + $0x8] sm:$0xff]  ;;  %vm441_vm2 = vcmask 7168   ;;  %v1094_v15 = vmov -1e+30  }
  0x2e   : > { %v404_v11 = vmul.f32 %v401_v9, %v401_v9  ;;  %v405_v12 = vmul.f32 %v402_v10, %v402_v10  ;;  %442 = vst.msk [vmem:[#allocation3] sm:$0xff] %vm441_vm2, %v1094_v15  ;;  %443 = vst.msk [vmem:[#allocation3 + $0x8] sm:$0xff] %vm441_vm2, %v1094_v15  ;;  %v1095_v16 = vmov 0.0   ;;  %v910_v24 = vld [vmem:[%s1295_s2] ss:$0 sm:$0xff]  ;;  %vm438_vm3 = vcmask 519168  }
  0x2f   : > { %444 = vst.msk [vmem:[#allocation4] sm:$0xff] %vm441_vm2, %v1095_v16  ;;  %445 = vst.msk [vmem:[#allocation4 + $0x8] sm:$0xff] %vm441_vm2, %v1095_v16 }
  0x30   : > { %v407_v13 = vsel %vm406_vm1, %v404_v11, 0.0  ;;  %v410_v14 = vsel %vm406_vm1, %v405_v12, 0.0  ;;  %446 = vst.msk [vmem:[#allocation5] sm:$0xff] %vm441_vm2, %v1095_v16  ;;  %447 = vst.msk [vmem:[#allocation5 + $0x8] sm:$0xff] %vm441_vm2, %v1095_v16 }
  0x31   : > { %408 = vadd.xlane.f32.xlu0 %v407_v13 }
  0x35   : > { %411 = vadd.xlane.f32.xlu0 %v410_v14 }
  0xba   : > { %v409_v17 = vpop.xlane.xlu0 %408 }
  0xbb   : > { %v414_v18 = vmul.f32 0.015625, %v409_v17 }
  0xbd   : > { %v416_v19 = vadd.f32 1e-05, %v414_v18 }
  0xbe   : > { %v412_v20 = vpop.xlane.xlu0 %411 }
  0xbf   : > { %990 = vrsqrt.f32 %v416_v19  ;;  %v415_v21 = vmul.f32 0.015625, %v412_v20 }
  0xc1   : > { %v417_v22 = vadd.f32 1e-05, %v415_v21 }
  0xc3   : > { %992 = vrsqrt.f32 %v417_v22 }
  0xcc   : > { %v991_v23 = vpop.eup %990 }
  0xcd   : > { %v420_v25 = vmul.f32 %v991_v23, %v401_v9 }
  0xcf   : > { %v428_v26 = vmul.f32 %v910_v24, %v420_v25 }
  0xd0   : > { %v993_v27 = vpop.eup %992 }
  0xd1   : > { %v934_v28 = vpack.c.bf16 %v428_v26, %v428_v26  ;;  %v421_v29 = vmul.f32 %v993_v27, %v402_v10 }
  0xd3   : > { %439 = vst.msk [vmem:[#allocation2] sm:$0xf] %vm438_vm3, %v934_v28  ;;  %v429_v30 = vmul.f32 %v910_v24, %v421_v29 }
  0xd5   : > { %v935_v31 = vpack.c.bf16 %v429_v30, %v429_v30 }
  0xd7   : > { %440 = vst.msk [vmem:[#allocation2 + $0x4] sm:$0xf] %vm438_vm3, %v935_v31 }
  0xd8 PF: > { %v996_v32 = vld [vmem:[%s1198_s30 + $0x34] ss:$8 sps:$4 sm:$0xff]   ;;  %v998_v33 = vld [vmem:[%s1198_s30 + $0x30] ss:$8 sps:$4 sm:$0xff]   ;;  %v1096_v34 = vmov 0   ;;  %vm515_vm4 = vcmask 523264   ;;  %v460_v42 = vlaneseq }
  0xd9   : > { %551 = vmatprep.mubr.bf16.mxu0 %v1096_v34  ;;  %995 = vset.pattern.permute.xlu0 %v1096_v34  ;;  %v999_v35 = vld [vmem:[%s1198_s30 + $0x24] ss:$8 sps:$4 sm:$0xff]   ;;  %v1001_v36 = vld [vmem:[%s1198_s30 + $0x20] ss:$8 sps:$4 sm:$0xff]   ;;  %v1002_v37 = vld [vmem:[%s1198_s30 + $0x14] ss:$8 sps:$4 sm:$0xff]  }
  0xda   : > { %527 = vmatprep.subr.bf16.mxu0 %v996_v32  ;;  %994 = vset.pattern.permute.xlu1 %v1096_v34  ;;  %v1004_v38 = vld [vmem:[%s1198_s30 + $0x10] ss:$8 sps:$4 sm:$0xff]   ;;  %v1005_v39 = vld [vmem:[%s1198_s30 + $0x4] ss:$8 sps:$4 sm:$0xff]   ;;  %v1007_v40 = vld [vmem:[%s1198_s30] ss:$8 sps:$4 sm:$0xff]  }
  0xdb   : > { %528 = vmatpush1.bf16.msra.mxu0 %v998_v33  ;;  %v1220_v43 = vshrl.u32 %v460_v42, 7  ;;  %v458_v45 = vld [vmem:[%s385_s29] sm:$0x3]  ;;  %v566_v60 = vld [vmem:[#allocation3] sm:$0xff]  ;;  %vm616_vm5 = vcmask 7168   ;;  %v622_v63 = vand.u32 127, %v460_v42 }
  0xdc   : > { %529 = vmatprep.subr.bf16.mxu0 %v999_v35  ;;  %v628_v59 = vld [vmem:[%s1294_s1] sm:$0xff]  ;;  %v567_v0 = vld [vmem:[#allocation3 + $0x8] sm:$0xff]  ;;  %s923_s19 = sshll.u32 %s1083_s23, 8  ;;  %v629_v7 = vld [vmem:[%s1294_s1 + $0x8] sm:$0xff]  ;;  %p924_p0 = scmp.ne.s32.totalorder %s1083_s23, 1 }
  0xdd   : > { %v462_v44 = vsub.s32 0, %v1220_v43  ;;  %v466_v46 = vsub.s32 1, %v1220_v43  ;;  %v623_v4 = vadd.s32 128, %v622_v63  ;;  %v625_v5 = vstv %s923_s19  ;;  %v640_v33 = vld [vmem:[#allocation5] sm:$0xff] }
  0xde   : > { %v1008_v41 = vld [vmem:[#allocation2] sm:$0xff]   ;;  %v626_v8 = vadd.s32 %v625_v5, %v622_v63 }
  0xdf   : > { %530 = vmatpush1.bf16.msra.mxu0 %v1001_v36  ;;  %v463_v47 = vrot.slane %v458_v45, %v462_v44  ;;  %v467_v48 = vrot.slane %v458_v45, %v466_v46  ;;  %v627_v9 = vadd.s32 %v625_v5, %v623_v4  ;;  %v577_v45 = vld [vmem:[#allocation4 + $0x8] sm:$0xff] }
  0xe0   : > { %531 = vmatprep.subr.bf16.mxu0 %v1002_v37 }
  0xe3   : > { %532 = vmatpush1.bf16.msra.mxu0 %v1004_v38 }
  0xe4   : > { %533 = vmatprep.subr.bf16.mxu0 %v1005_v39 }
  0xe7   : > { %534 = vmatpush1.bf16.msra.mxu0 %v1007_v40  ;;  %v576_v40 = vld [vmem:[#allocation4] sm:$0xff] }
  0xea   : > { %922 = vmatmul.mubr.msk.bf16.vlgmr.msra.gmra.mxu0 %vm515_vm4, %v1008_v41 }
 0x1aa   : > { %v553_v49 = vpop.f32.mrf.mxu0 }
 0x1ab   : > { %v554_v50 = vadd.f32 %v553_v49, %v463_v47 }
 0x1ac   : > { %v555_v51 = vpop.f32.mrf.mxu0 }
 0x1ad   : > { %562 = vst [vmem:[%s1200_s9] sm:$0xff] %v554_v50  ;;  %v556_v52 = vadd.f32 %v555_v51, %v467_v48 }
 0x1ae   : > { %v557_v53 = vpop.f32.mrf.mxu0 }
 0x1af   : > { %563 = vst [vmem:[%s1200_s9 + $0x8] sm:$0xff] %v556_v52  ;;  %v1231_v54 = vadd.f32 %v557_v53, %v463_v47  ;;  %v568_v55 = vmax.f32 %v554_v50, %v556_v52 }
 0x1b0   : > { %v559_v56 = vpop.f32.mrf.mxu0 }
 0x1b1   : > { %564 = vst [vmem:[%s1200_s9 + $0x10] sm:$0xff] %v1231_v54  ;;  %v560_v57 = vadd.f32 %v559_v56, %v467_v48  ;;  %569 = vmax.xlane.f32.xlu0 %v568_v55 }
 0x1b3   : > { %565 = vst [vmem:[%s1200_s9 + $0x18] sm:$0xff] %v560_v57  ;;  %v571_v58 = vmax.f32 %v1231_v54, %v560_v57 }
 0x1b5   : > { %572 = vmax.xlane.f32.xlu0 %v571_v58 }
 0x1cb   : > { %631 = vperm.xlu0 %995, %v628_v59  }
 0x23a   : > { %v570_v61 = vpop.xlane.xlu0 %569 }
 0x23b   : > { %v574_v62 = vmax.f32 %v566_v60, %v570_v61 }
 0x23d   : > { %v578_v1 = vsub.f32 %v566_v60, %v574_v62  ;;  %619 = vst.msk [vmem:[#allocation3] sm:$0xff] %vm616_vm5, %v574_v62  ;;  %588 = vperm.xlu1 %994, %v574_v62  }
 0x23e   : > { %v573_v2 = vpop.xlane.xlu0 %572 }
 0x23f   : > { %v575_v3 = vmax.f32 %v567_v0, %v573_v2  ;;  %v580_v37 = vmul.f32 1.442695, %v578_v1 }
 0x241   : > { %v579_v6 = vsub.f32 %v567_v0, %v575_v3  ;;  %620 = vst.msk [vmem:[#allocation3 + $0x8] sm:$0xff] %vm616_vm5, %v575_v3  ;;  %593 = vperm.xlu1 %994, %v575_v3  }
 0x243   : > { %v582_v38 = vmul.f32 1.442695, %v579_v6 }
 0x245   : > { %634 = vperm.xlu1 %994, %v629_v7  }
 0x246   : > { %v632_v10 = vpop.permute.xlu0 %631 }
 0x247   : > { %vm636_vm6 = vcmp.eq.s32.totalorder %v626_v8, %v632_v10  ;;  %vm637_vm7 = vcmp.eq.s32.totalorder %v627_v9, %v632_v10 }
 0x248   : > { %v642_v11 = vsel %vm636_vm6, %v554_v50, 0.0  ;;  %v643_v12 = vsel %vm637_vm7, %v556_v52, 0.0 }
 0x249   : > { %v646_v13 = vadd.f32 %v643_v12, %v642_v11 }
 0x24b   : > { %647 = vadd.xlane.f32.xlu0 %v646_v13 }
 0x2b8   : > { %v589_v14 = vpop.permute.xlu1 %588 }
 0x2b9   : > { %v596_v15 = vsub.f32 %v554_v50, %v589_v14  ;;  %v597_v16 = vsub.f32 %v556_v52, %v589_v14  ;;  %v641_v50 = vld [vmem:[#allocation5 + $0x8] sm:$0xff] }
 0x2bb   : > { %v600_v17 = vmul.f32 1.442695, %v596_v15  ;;  %v602_v18 = vmul.f32 1.442695, %v597_v16 }
 0x2bc   : > { %v594_v19 = vpop.permute.xlu1 %593 }
 0x2bd   : > { %1009 = vpow2.f32 %v600_v17  ;;  %v598_v20 = vsub.f32 %v1231_v54, %v594_v19  ;;  %v599_v21 = vsub.f32 %v560_v57, %v594_v19 }
 0x2be   : > { %1011 = vpow2.f32 %v602_v18 }
 0x2bf   : > { %v604_v22 = vmul.f32 1.442695, %v598_v20  ;;  %v606_v23 = vmul.f32 1.442695, %v599_v21 }
 0x2c0   : > { %v635_v26 = vpop.permute.xlu1 %634 }
 0x2c1   : > { %1013 = vpow2.f32 %v604_v22  ;;  %vm638_vm8 = vcmp.eq.s32.totalorder %v626_v8, %v635_v26  ;;  %vm639_vm9 = vcmp.eq.s32.totalorder %v627_v9, %v635_v26 }
 0x2c2   : > { %1015 = vpow2.f32 %v606_v23  ;;  %v644_v31 = vsel %vm638_vm8, %v1231_v54, 0.0  ;;  %v645_v32 = vsel %vm639_vm9, %v560_v57, 0.0 }
 0x2c3   : > { %v649_v35 = vadd.f32 %v645_v32, %v644_v31  ;;  %1017 = vpow2.f32 %v580_v37 }
 0x2c4   : > { %1019 = vpow2.f32 %v582_v38 }
 0x2ca   : > { %v1010_v24 = vpop.eup %1009 }
 0x2cb   : > { %v1012_v25 = vpop.eup %1011 }
 0x2cc   : > { %v608_v27 = vadd.f32 %v1012_v25, %v1010_v24 }
 0x2ce   : > { %v1014_v28 = vpop.eup %1013  ;;  %609 = vadd.xlane.f32.xlu1 %v608_v27 }
 0x2cf   : > { %v1016_v29 = vpop.eup %1015 }
 0x2d0   : > { %v611_v30 = vadd.f32 %v1016_v29, %v1014_v28  ;;  %v1018_v39 = vpop.eup %1017 }
 0x2d1   : > { %v584_v41 = vmul.f32 %v1018_v39, %v576_v40  ;;  %v1020_v42 = vpop.eup %1019 }
 0x2d2   : > { %612 = vadd.xlane.f32.xlu1 %v611_v30  ;;  %v585_v47 = vmul.f32 %v1020_v42, %v577_v45 }
 0x2d4   : > { %v648_v34 = vpop.xlane.xlu0 %647 }
 0x2d5   : > { %v652_v36 = vadd.f32 %v648_v34, %v640_v33 }
 0x2d6   : > { %650 = vadd.xlane.f32.xlu1 %v649_v35 }
 0x2d7   : > { %654 = vst.msk [vmem:[#allocation5] sm:$0xff] %vm616_vm5, %v652_v36 }
 0x357   : > { %v610_v44 = vpop.xlane.xlu1 %609 }
 0x358   : > { %v614_v46 = vadd.f32 %v610_v44, %v584_v41 }
 0x35a   : > { %617 = vst.msk [vmem:[#allocation4] sm:$0xff] %vm616_vm5, %v614_v46 }
 0x35b   : > { %v613_v48 = vpop.xlane.xlu1 %612 }
 0x35c   : > { %v615_v49 = vadd.f32 %v613_v48, %v585_v47 }
 0x35e   : > { %618 = vst.msk [vmem:[#allocation4 + $0x8] sm:$0xff] %vm616_vm5, %v615_v49  ;;  %659 = sbr.rel (%p924_p0) target bundleno = 1100 (0x44c), region = 90 }
 0x35f   : > { %v651_v51 = vpop.xlane.xlu1 %650 }
 0x360   : > { %v653_v52 = vadd.f32 %v651_v51, %v641_v50 }
 0x362   : > { %655 = vst.msk [vmem:[#allocation5 + $0x8] sm:$0xff] %vm616_vm5, %v653_v52 }
 0x363   : > { %v662_v53 = vld [vmem:[#allocation4] sm:$0xff]  ;;  %v676_v55 = vadd.s32 8, %v1220_v43  ;;  %v660_v57 = vld [vmem:[#allocation3] sm:$0xff]  ;;  %v685_v58 = vand.u32 7, %v1220_v43  ;;  %v661_v60 = vld [vmem:[#allocation3 + $0x8] sm:$0xff]  ;;  %vm726_vm12 = vcmask 0  }
 0x364   : > { %1021 = vlog2.f32 %v662_v53  ;;  %v670_v0 = vld [vmem:[#allocation5] sm:$0xff]  ;;  %v709_v17 = vld [vmem:[#allocation8] sm:$0x1] }
 0x365   : > { %v663_v54 = vld [vmem:[#allocation4 + $0x8] sm:$0xff]  ;;  %v692_v62 = vand.u32 7, %v676_v55  ;;  %vm705_vm10 = vcmp.ne.s32.totalorder %v685_v58, 7 }
 0x366   : > { %1023 = vlog2.f32 %v663_v54 }
 0x367   : > { %vm706_vm11 = vcmp.ne.s32.totalorder %v692_v62, 7 }
 0x369   : > { %v671_v2 = vld [vmem:[#allocation5 + $0x8] sm:$0xff] }
 0x371   : > { %v1022_v56 = vpop.eup %1021 }
 0x372   : > { %v665_v61 = vmul.f32 0.6931472, %v1022_v56 }
 0x373   : > { %v1024_v59 = vpop.eup %1023 }
 0x374   : > { %v667_v63 = vmul.f32 0.6931472, %v1024_v59  ;;  %v668_v1 = vadd.f32 %v665_v61, %v660_v57 }
 0x376   : > { %v669_v3 = vadd.f32 %v667_v63, %v661_v60  ;;  %v672_v4 = vsub.f32 %v668_v1, %v670_v0 }
 0x378   : > { %v673_v5 = vsub.f32 %v669_v3, %v671_v2  ;;  %v707_v6 = vsel %vm705_vm10, %v672_v4, 0.0 }
 0x379   : > { %v710_v8 = vsel %vm616_vm5, %v707_v6, 0.0 }
 0x37a   : > { %v708_v7 = vsel %vm706_vm11, %v673_v5, 0.0 }
 0x37b   : > { %v711_v9 = vsel %vm616_vm5, %v708_v7, 0.0 }
 0x37c   : > { %v712_v43 = vadd.f32 %v711_v9, %v710_v8 }
 0x37e   : > { %713 = vadd.xlane.f32.xlu0 %v712_v43 }
 0x407   : > { %v714_v10 = vpop.xlane.xlu0 %713 }
 0x408   : > { %v715_v11 = vrot.slane %v714_v10, 4 }
 0x40a   : > { %v716_v12 = vadd.f32 %v715_v11, %v714_v10 }
 0x40c   : > { %v717_v13 = vrot.slane %v716_v12, 2 }
 0x40e   : > { %v718_v14 = vadd.f32 %v717_v13, %v716_v12 }
 0x410   : > { %v719_v15 = vrot.slane %v718_v14, 1 }
 0x412   : > { %v720_v16 = vadd.f32 %v719_v15, %v718_v14 }
 0x414   : > { %937 = vpush %v720_v16 }
 0x445   : > { %s938_s29 = spop %937 }
 0x446   : > { %v722_v18 = vstv %s938_s29 }
 0x447   : > { %v724_v19 = vmul.f32 0.071428575, %v722_v18 }
 0x449   : > { %v725_v20 = vadd.f32 %v724_v19, %v709_v17 }
 0x44b   : > { %727 = vst.msk [vmem:[#allocation8] sm:$0x1] %vm726_vm12, %v725_v20 }
 0x44c PF: > { %734 = sbr.rel (!%p1174_p6) target bundleno = 1105 (0x451), region = 94  ;;  %s936_s30 = sshll.u32 (%p1174_p6), %s1083_s23, 4  ;;  %v753_v21 = vld [vmem:[%s1200_s9] sm:$0xff] (%p1174_p6)  ;;  %v755_v22 = vld [vmem:[%s1200_s9 + $0x8] sm:$0xff] (%p1174_p6)  ;;  %v757_v23 = vld [vmem:[%s1200_s9 + $0x10] sm:$0xff] (%p1174_p6) }
 0x44d   : > { %s740_s11 = scalar_lea.vmem (%p1174_p6), %s1298_s5, %s936_s30  ;;  %v759_v24 = vld [vmem:[%s1200_s9 + $0x18] sm:$0xff] (%p1174_p6) }
 0x44e   : > { %754 = vst [vmem:[%s740_s11] sm:$0xff] (%p1174_p6), %v753_v21  ;;  %756 = vst [vmem:[%s740_s11 + $0x8] sm:$0xff] (%p1174_p6), %v755_v22 }
 0x44f   : > { %758 = vst [vmem:[%s740_s11 + $0x20] sm:$0xff] (%p1174_p6), %v757_v23  ;;  %760 = vst [vmem:[%s740_s11 + $0x28] sm:$0xff] (%p1174_p6), %v759_v24 }
 0x451 PF: > { %s1097_s7 = smov [#allocation8]  }
 0x452   : > { %s771_s12 = sshll.u32 %s1097_s7, 4  ;;  %s772_s12 = int_to_ptr.vmem [resolvable:$true] %s771_s12 }
 0x453   : > { %s1025_s13 = scalar_lea.vmem %s772_s12, 16  ;;  %s1031_s23 = scalar_lea.vmem %s772_s12, 32 }
 0x454   : > { %p1026_p1 = scmp.ne.s32.totalorder %s772_s12, %s1025_s13  ;;  %p1032_p5 = scmp.lt.s32.totalorder %s772_s12, %s772_s12 }
 0x455   : > { %p1033_p6 = scmp.lt.s32.totalorder %s1031_s23, %s1025_s13 }
 0x456   : > { %p1027_p2 = pnand %p1026_p1, %p1165_p4 }
 0x457   : > { %p1034_p7 = por %p1033_p6, %p1032_p5 }
 0x458   : > { %p1028_p3 = pneg %p1027_p2 }
 0x45a   : > { %p1035_p8 = pnand %p1034_p7, %p1028_p3 }
 0x45c   : > { %1038 = shalt.err (!%p1035_p8)
}
 0x45d   : > { %940 = dma.vmem_to_hbm [thread:$0]  (%p1165_p4), %s772_s12, 16, %s1299_s6, [#allocation9]  }
 0x45e   : > { %1070 = dma.done.wait (%p1165_p4), [#allocation9], 16  }
 0x45f   : > { %1072 = vsyncadd (%p1165_p4), [#allocation9], 4294967280 }
 0x460 PF: > { %s18_s25 = sadd.s32 1, %s1091_s25   ;;  %s1302_s21 = smov %s1079_s22 }
 0x461   : > { %p15_p9 = scmp.ge.s32.totalorder %s18_s25, 4   ;;  %s1303_s22 = smov %s1179_s8 }
 0x462   : > { %s1304_s23 = smov %s1087_s24  ;;  %s1305_s24 = smov %s1307_s26 }
 0x463   :  { %17 = sbr.rel (!%p15_p9) target bundleno = 3 (0x3), region = 166 }
 0x468   :  { %791 = vsyncpa [#allocation9], 1 }
 0x469   :  { %793 = vsyncpa [#allocation9 + $0x1], 1 }

// kernel: transformer_forward.2
= control target key start
LH: loop header
LB: loop body
LE: loop exit
PB: predicated region body
PF: predicated region fallthrough
CT: control target
= control target key end

     0   :  { %s3394_s0 = inlined_call_operand.vmem [shape: f32[2,8,64], index: 0, kind: input, shape index: {}, may-alias: {0,8}]   ;;  %s3395_s1 = inlined_call_operand.vmem [shape: f32[2,1,64], index: 1, kind: input, shape index: {}]   ;;  %s3396_s2 = inlined_call_operand.vmem [shape: bf16[2,64,192], index: 2, kind: input, shape index: {}]   ;;  %s3397_s3 = inlined_call_operand.vmem [shape: bf16[2,64,64], index: 3, kind: input, shape index: {}]   ;;  %s3398_s4 = inlined_call_operand.vmem [shape: f32[2,1,64], index: 4, kind: input, shape index: {}]   ;;  %s3399_s5 = inlined_call_operand.vmem [shape: bf16[2,64,256], index: 5, kind: input, shape index: {}]   ;;  %s3400_s6 = inlined_call_operand.vmem [shape: bf16[2,64,256], index: 6, kind: input, shape index: {}]   ;;  %s3401_s7 = inlined_call_operand.vmem [shape: bf16[2,256,64], index: 7, kind: input, shape index: {}]   ;;  %s3402_s8 = inlined_call_operand.vmem [shape: f32[2,8,64], index: 8, kind: output, shape index: {}, may-alias: {0,8}]  }
   0x1   :  { %3405 = sst [smem:[#allocation8_spill]] %s3399_s5 }
   0x2   :  { %3406 = sst [smem:[#allocation9_spill]] %s3400_s6 }
   0x3   :  { %s2965_s27 = smov 0   ;;  %s2967_s28 = smov 0  }
   0x4   :  { %s2969_s29 = smov 0   ;;  %s2971_s30 = smov 0  }
   0x5   :  { %s2973_s9 = smov 0   ;;  %s2975_s10 = smov 0  }
   0x6   :  { %s2977_s11 = smov 0  }
   0x7 LB: > { %s30_s12 = sadd.s32 1, %s2897_s9  ;;  %s33_s13 = sadd.s32 1, %s2901_s10  ;;  %s2905_s11 = sphi %s2977_s11, %s18_s11   ;;  %s2901_s10 = sphi %s2975_s10, %s3420_s10   ;;  %s2897_s9 = sphi %s2973_s9, %s3419_s9   ;;  %s2893_s30 = sphi %s2971_s30, %s3418_s30   ;;  %s2889_s29 = sphi %s2969_s29, %s3417_s29   ;;  %s2885_s28 = sphi %s2967_s28, %s3416_s28   ;;  %s2881_s27 = sphi %s2965_s27, %s3415_s27  }
   0x8   : > { %p31_p0 = scmp.ge.s32.totalorder %s30_s12, 2  ;;  %p183_p1 = scmp.ne.s32.totalorder %s2885_s28, %s2881_s27 }
   0x9   : > { %p184_p2 = scmp.eq.s32.totalorder %s2905_s11, 0  ;;  %s176_s18 = sadd.s32 1, %s2885_s28 }
   0xa   : > { %s3422_s12 = smov (%p31_p0, %s30_s12), 0  ;;  %s3424_s13 = smov (!%p31_p0, %s33_s13), %s2901_s10 }
   0xb   : > { %3407 = sst [smem:[#allocation6_spill]] %s3422_s12  ;;  %p3008_p3 = por %p184_p2, %p183_p1 }
   0xc   : > { %p35_p4 = scmp.ge.s32.totalorder %s3424_s13, 2  ;;  %s172_s15 = ssub.s32 %s2897_s9, %s3422_s12 }
   0xd   : > { %p2395_p6 = scmp.ge.s32.totalorder %s2905_s11, 4 }
   0xe   : > { %s3426_s13 = smov (%p35_p4, %s3424_s13), 0 }
   0xf   : > { %3409 = sst [smem:[#allocation7_spill]] %s3426_s13  ;;  %s171_s16 = ssub.s32 %s2901_s10, %s3426_s13 }
  0x10   : > { %s173_s17 = sor.u32 %s172_s15, %s171_s16  ;;  %300 = sbr.rel (%p2395_p6) target bundleno = 51 (0x33), region = 20 }
  0x11   : > { %p174_p5 = scmp.eq.s32.totalorder %s173_s17, 0 }
  0x13   : > { %s3020_s19 = scalar_select %p174_p5, %s2885_s28, %s176_s18  }
  0x15   : > { %331 = sbr.rel (!%p3008_p3) target bundleno = 36 (0x24), region = 40  ;;  %s333_s20 = sand.u32 (%p3008_p3), 1, %s2885_s28  }
  0x16   : > { %s2397_s21 = sshll.u32 (%p3008_p3), %s2901_s10, 4  ;;  %s2396_s22 = sshll.u32 (%p3008_p3), %s333_s20, 5 }
  0x17   : > { %s337_s23 = sadd.s32 (%p3008_p3), %s2897_s9, %s2397_s21  ;;  %s3410_s5 = sld [smem:[#allocation8_spill]] (%p3008_p3) }
  0x18   : > { %s2398_s24 = sshll.u32 (%p3008_p3), %s337_s23, 2  ;;  %s335_s16 = scalar_lea.vmem (%p3008_p3), [#allocation4], %s2396_s22 }
  0x1d   : > { %s339_s15 = scalar_lea.vmem %s3410_s5, %s2398_s24 }
  0x1e   : > { %v356_v0 = vld [vmem:[%s339_s15] sm:$0xf]  ;;  %v358_v1 = vld [vmem:[%s339_s15 + $0x8] sm:$0xf]  ;;  %v360_v2 = vld [vmem:[%s339_s15 + $0x10] sm:$0xf] }
  0x1f   : > { %357 = vst [vmem:[%s335_s16] sm:$0xf] %v356_v0  ;;  %359 = vst [vmem:[%s335_s16 + $0x4] sm:$0xf] %v358_v1  ;;  %v362_v3 = vld [vmem:[%s339_s15 + $0x18] sm:$0xf] }
  0x20   : > { %361 = vst [vmem:[%s335_s16 + $0x8] sm:$0xf] %v360_v2  ;;  %v364_v4 = vld [vmem:[%s339_s15 + $0x20] sm:$0xf]  ;;  %v366_v5 = vld [vmem:[%s339_s15 + $0x28] sm:$0xf] }
  0x21   : > { %363 = vst [vmem:[%s335_s16 + $0xc] sm:$0xf] %v362_v3  ;;  %365 = vst [vmem:[%s335_s16 + $0x10] sm:$0xf] %v364_v4  ;;  %v368_v6 = vld [vmem:[%s339_s15 + $0x30] sm:$0xf] }
  0x22   : > { %367 = vst [vmem:[%s335_s16 + $0x14] sm:$0xf] %v366_v5  ;;  %v370_v7 = vld [vmem:[%s339_s15 + $0x38] sm:$0xf]  ;;  %369 = vst [vmem:[%s335_s16 + $0x18] sm:$0xf] %v368_v6 }
  0x23   : > { %371 = vst [vmem:[%s335_s16 + $0x1c] sm:$0xf] %v370_v7 }
  0x24 PF: > { %411 = sbr.rel (!%p3008_p3) target bundleno = 51 (0x33), region = 81  ;;  %s413_s17 = sand.u32 (%p3008_p3), 1, %s2885_s28  }
  0x25   : > { %s2400_s18 = sshll.u32 (%p3008_p3), %s2901_s10, 4  ;;  %s2399_s20 = sshll.u32 (%p3008_p3), %s413_s17, 5 }
  0x26   : > { %s417_s21 = sadd.s32 (%p3008_p3), %s2897_s9, %s2400_s18  ;;  %s3411_s6 = sld [smem:[#allocation9_spill]] (%p3008_p3) }
  0x27   : > { %s2401_s22 = sshll.u32 (%p3008_p3), %s417_s21, 2  ;;  %s415_s26 = scalar_lea.vmem (%p3008_p3), [#allocation5], %s2399_s20 }
  0x2c   : > { %s419_s25 = scalar_lea.vmem %s3411_s6, %s2401_s22 }
  0x2d   : > { %v436_v8 = vld [vmem:[%s419_s25] sm:$0xf]  ;;  %v438_v9 = vld [vmem:[%s419_s25 + $0x8] sm:$0xf]  ;;  %v440_v10 = vld [vmem:[%s419_s25 + $0x10] sm:$0xf] }
  0x2e   : > { %437 = vst [vmem:[%s415_s26] sm:$0xf] %v436_v8  ;;  %439 = vst [vmem:[%s415_s26 + $0x4] sm:$0xf] %v438_v9  ;;  %v442_v11 = vld [vmem:[%s419_s25 + $0x18] sm:$0xf] }
  0x2f   : > { %441 = vst [vmem:[%s415_s26 + $0x8] sm:$0xf] %v440_v10  ;;  %v444_v12 = vld [vmem:[%s419_s25 + $0x20] sm:$0xf]  ;;  %v446_v13 = vld [vmem:[%s419_s25 + $0x28] sm:$0xf] }
  0x30   : > { %443 = vst [vmem:[%s415_s26 + $0xc] sm:$0xf] %v442_v11  ;;  %445 = vst [vmem:[%s415_s26 + $0x10] sm:$0xf] %v444_v12  ;;  %v448_v14 = vld [vmem:[%s419_s25 + $0x30] sm:$0xf] }
  0x31   : > { %447 = vst [vmem:[%s415_s26 + $0x14] sm:$0xf] %v446_v13  ;;  %v450_v15 = vld [vmem:[%s419_s25 + $0x38] sm:$0xf]  ;;  %449 = vst [vmem:[%s415_s26 + $0x18] sm:$0xf] %v448_v14 }
  0x32   : > { %451 = vst [vmem:[%s415_s26 + $0x1c] sm:$0xf] %v450_v15 }
  0x33 PF: > { %p2402_p7 = scmp.ge.s32.totalorder %s2905_s11, 1  ;;  %p503_p8 = scmp.lt.s32.totalorder %s2905_s11, 5 }
  0x35   : > { %p504_p9 = pnand %p2402_p7, %p503_p8 }
  0x36   : > { %s510_s14 = sand.u32 (!%p504_p9), 1, %s2881_s27   ;;  %p590_p10 = scmp.lt.s32.totalorder (!%p504_p9), %s2893_s30, 1 }
  0x37   : > { %507 = sbr.rel (%p504_p9) target bundleno = 4059 (0xfdb), region = 126  ;;  %s2403_s15 = sshll.u32 (!%p504_p9), %s510_s14, 5 }
  0x38   : > { %s2409_s16 = sshll.u32 (!%p504_p9), %s2889_s29, 4  ;;  %p623_p12 = scmp.eq.s32.totalorder (!%p504_p9), %s2893_s30, 0 }
  0x39   : > { %p609_p11 = scmp.lt.s32.totalorder (!%p504_p9), %s2409_s16, 31  ;;  %p624_p13 = scmp.eq.s32.totalorder (!%p504_p9), %s2889_s29, 0 }
  0x3a   : > { %s3074_s23 = scalar_lea.vmem (!%p504_p9), [#allocation4], %s2403_s15  ;;  %s3076_s24 = scalar_lea.vmem (!%p504_p9), [#allocation5], %s2403_s15 }
  0x3b   : > { %p625_p0 = pnand (!%p504_p9), %p624_p13, %p623_p12 }
  0x3c   : > { %s3045_s17 = scalar_select %p590_p10, %s2893_s30, 1 }
  0x3d   : > { %s3428_s16 = smov (!%p609_p11, %s2409_s16), 31 }
  0x3e   : > { %s2474_s22 = sshll.u32 %s3045_s17, 6  ;;  %s2475_s25 = sshll.u32 %s3045_s17, 5 }
  0x3f   : > { %s3056_s27 = scalar_lea.vmem %s3396_s2, %s2474_s22  ;;  %s3062_s5 = scalar_lea.vmem %s3397_s3, %s2475_s25 }
  0x40   : > { %s605_s30 = scalar_lea.vmem %s3398_s4, %s3045_s17  ;;  %s612_s18 = sadd.s32 %s2475_s25, %s3428_s16 }
  0x41   : > { %s2411_s20 = sshll.u32 %s612_s18, 2  ;;  %628 = sbr.rel (%p625_p0) target bundleno = 72 (0x48), region = 138 }
  0x42   : > { %s3072_s22 = scalar_lea.vmem %s3401_s7, %s2411_s20 }
  0x46   : > { %v629_v16 = vld [vmem:[%s3394_s0] sm:$0xff]  ;;  %vm631_vm0 = vcmask 523264   ;;  %v630_v17 = vld [vmem:[%s3394_s0 + $0x8] sm:$0xff] }
  0x47   : > { %632 = vst.msk [vmem:[%s3402_s8] sm:$0xff] %vm631_vm0, %v629_v16  ;;  %633 = vst.msk [vmem:[%s3402_s8 + $0x8] sm:$0xff] %vm631_vm0, %v630_v17 }
  0x48 PF: > { %p2412_p1 = scmp.ne.s32.totalorder %s2889_s29, 0 }
  0x49   : > { %s2910_s13 = smov (!%p2412_p1), 64   ;;  %s2912_s16 = smov (!%p2412_p1), 48  }
  0x4a   : > { %636 = sbr.rel (%p2412_p1) target bundleno = 3595 (0xe0b), region = 142  ;;  %s2913_s25 = smov (!%p2412_p1), 112  }
  0x4b   : > { %s2914_s12 = smov (!%p2412_p1), 32   ;;  %s2915_s21 = smov (!%p2412_p1), 96  }
  0x4c   : > { %s2916_s15 = smov (!%p2412_p1), 16   ;;  %s2917_s18 = smov (!%p2412_p1), 80  }
  0x4f   : > { %v3094_v18 = vld [vmem:[%s3402_s8] sm:$0xff]  ;;  %vm642_vm1 = vcmask 523264   ;;  %v3099_v19 = vld [vmem:[%s3402_s8 + $0x8] sm:$0xff]  ;;  %v2907_v21 = vmov 0.0   ;;  %v2770_v25 = vld [vmem:[%s3056_s27 + $0x34] ss:$8 sps:$4 sm:$0xff]   ;;  %v761_v62 = vlaneseq }
  0x50   : > { %v640_v20 = vmul.f32 %v3094_v18, %v3094_v18  ;;  %1922 = vst.msk [vmem:[#allocation3] sm:$0xff] %vm642_vm1, %v2907_v21  ;;  %1923 = vst.msk [vmem:[#allocation3 + $0x8] sm:$0xff] %vm642_vm1, %v2907_v21  ;;  %v641_v22 = vmul.f32 %v3099_v19, %v3099_v19  ;;  %2537 = vmatprep.subr.bf16.mxu1 %v2907_v21  ;;  %v2772_v26 = vld [vmem:[%s3056_s27 + $0x30] ss:$8 sps:$4 sm:$0xff]   ;;  %v2773_v27 = vld [vmem:[%s3056_s27 + $0x24] ss:$8 sps:$4 sm:$0xff]   ;;  %726 = vmatprep.subr.bf16.mxu0 %v2770_v25 }
  0x51   : > { %727 = vmatpush1.bf16.msra.mxu0 %v2772_v26  ;;  %v2775_v28 = vld [vmem:[%s3056_s27 + $0x20] ss:$8 sps:$4 sm:$0xff]   ;;  %v2908_v29 = vmov 0   ;;  %v2776_v30 = vld [vmem:[%s3056_s27 + $0x14] ss:$8 sps:$4 sm:$0xff]   ;;  %vm2909_vm2 = vmmov 0  }
  0x52   : > { %v643_v23 = vsel %vm642_vm1, %v640_v20, 0.0  ;;  %v646_v24 = vsel %vm642_vm1, %v641_v22, 0.0  ;;  %750 = vmatprep.mubr.bf16.mxu0 %v2908_v29  ;;  %728 = vmatprep.subr.bf16.mxu0 %v2773_v27  ;;  %v2778_v31 = vld [vmem:[%s3056_s27 + $0x10] ss:$8 sps:$4 sm:$0xff]   ;;  %v2779_v32 = vld [vmem:[%s3056_s27 + $0x4] ss:$8 sps:$4 sm:$0xff]  }
  0x53   : > { %644 = vadd.xlane.f32.xlu0 %v643_v23  ;;  %v2781_v33 = vld [vmem:[%s3056_s27] ss:$8 sps:$4 sm:$0xff]   ;;  %s3412_s27 = scalar_lea.vmem %s3395_s1, %s3045_s17  ;;  %2539 = vmatprep.mubr.msk.bf16.mxu1 %vm2909_vm2, %v2907_v21  ;;  %vm910_vm3 = vcmask 1043456   ;;  %vm782_vm4 = vcmask 130048   ;;  %v762_v63 = vshrl.u32 %v761_v62, 7  ;;  %v764_v0 = vand.u32 127, %v761_v62 }
  0x54   : > { %v2413_v43 = vld [vmem:[%s3412_s27] ss:$0 sm:$0xff]  ;;  %v2911_v2 = vmov -1e+30   ;;  %vm882_vm6 = vcmask 64512   ;;  %vm1919_vm7 = vcmask 519168  }
  0x55   : > { %729 = vmatpush1.bf16.msra.mxu0 %v2775_v28  ;;  %vm765_vm5 = vcmp.le.s32.totalorder %v764_v0, %v762_v63 }
  0x56   : > { %730 = vmatprep.subr.bf16.mxu0 %v2776_v30  ;;  %v3161_v3 = vsel %vm765_vm5, 0.0, %v2911_v2 }
  0x57   : > { %647 = vadd.xlane.f32.xlu0 %v646_v24 }
  0x59   : > { %731 = vmatpush1.bf16.msra.mxu0 %v2778_v31 }
  0x5a   : > { %732 = vmatprep.subr.bf16.mxu0 %v2779_v32 }
  0x5d   : > { %733 = vmatpush1.bf16.msra.mxu0 %v2781_v33 }
  0x5e   : > { %2549 = vmatprep.subr.bf16.mxu0 %v2907_v21 }
  0xdc   : > { %v645_v34 = vpop.xlane.xlu0 %644 }
  0xdd   : > { %v650_v35 = vmul.f32 0.015625, %v645_v34 }
  0xdf   : > { %v652_v36 = vadd.f32 1e-05, %v650_v35 }
  0xe0   : > { %v648_v37 = vpop.xlane.xlu0 %647 }
  0xe1   : > { %2786 = vrsqrt.f32 %v652_v36  ;;  %v651_v38 = vmul.f32 0.015625, %v648_v37 }
  0xe3   : > { %v653_v39 = vadd.f32 1e-05, %v651_v38 }
  0xe5   : > { %2788 = vrsqrt.f32 %v653_v39 }
  0xee   : > { %v2787_v40 = vpop.eup %2786 }
  0xef   : > { %v656_v41 = vmul.f32 %v2787_v40, %v3094_v18 }
  0xf1   : > { %v664_v45 = vmul.f32 %v2413_v43, %v656_v41 }
  0xf2   : > { %v2789_v42 = vpop.eup %2788 }
  0xf3   : > { %v657_v44 = vmul.f32 %v2789_v42, %v3099_v19 }
  0xf5   : > { %v665_v46 = vmul.f32 %v2413_v43, %v657_v44 }
  0xf7   : > { %v666_v47 = vpack.c.bf16 %v665_v46, %v664_v45 }
  0xf9   : > { %2422 = vmatmul.mubr.msk.bf16.vlgmr.msra.gmra.mxu0 %vm642_vm1, %v666_v47 }
  0xfa   : > { %2551 = vmatprep.mubr.msk.bf16.mxu0 %vm2909_vm2, %v2907_v21 }
 0x1b9   : > { %v752_v48 = vpop.f32.mrf.mxu0 }
 0x1ba   : > { %v3133_v49 = vpack.c.bf16 %v752_v48, %v752_v48 }
 0x1bb   : > { %v754_v50 = vpop.f32.mrf.mxu0 }
 0x1bc   : > { %v3135_v51 = vpack.c.bf16 %v754_v50, %v754_v50  ;;  %780 = vrot.lane.b32.xlu1 %v3133_v49, %s2910_s13 }
 0x1bd   : > { %v756_v52 = vpop.f32.mrf.mxu0 }
 0x1be   : > { %v3138_v53 = vpack.c.bf16 %v756_v52, %v756_v52  ;;  %v912_v54 = vsel %vm910_vm3, %v3135_v51, 0 }
 0x1bf   : > { %2550 = vmatpush3.bf16.msra.mxu0 %v912_v54  ;;  %v758_v59 = vpop.f32.mrf.mxu0 }
 0x1c0   : > { %830 = vrot.lane.b32.xlu1 %v3138_v53, %s2910_s13  ;;  %2561 = vmatprep.subr.bf16.mxu0 %v2907_v21  ;;  %v3152_v60 = vpack.c.bf16 %v758_v59, %v758_v59 }
 0x1c2   : > { %v958_v61 = vsel %vm910_vm3, %v3152_v60, 0 }
 0x22e   : > { %v781_v55 = vpop.permute.xlu1 %780 }
 0x22f   : > { %v787_v56 = vsel %vm782_vm4, %v781_v55, 0 }
 0x230   : > { %2538 = vmatpush3.bf16.xpose.msra.mxu1 %v787_v56 }
 0x231   : > { %2543 = vmatprep.subr.bf16.mxu1 %v2907_v21 }
 0x232   : > { %v831_v57 = vpop.permute.xlu1 %830 }
 0x233   : > { %v836_v58 = vsel %vm782_vm4, %v831_v57, 0 }
 0x237   : > { %2540 = vmatmul.mubr.msk.bf16.vlgmr.msra.gmra.mxu1 %vm782_vm4, %v3133_v49 }
 0x238   : > { %2544 = vmatpush3.bf16.xpose.msra.mxu1 %v836_v58  ;;  %2545 = vmatprep.mubr.msk.bf16.mxu1 %vm2909_vm2, %v2907_v21 }
 0x239   : > { %2555 = vmatprep.subr.bf16.mxu1 %v2907_v21 }
 0x23f   : > { %2546 = vmatmul.mubr.msk.bf16.vlgmr.msra.gmra.mxu1 %vm782_vm4, %v3138_v53 }
 0x240   : > { %2556 = vmatpush3.bf16.msra.mxu1 %v958_v61  ;;  %2557 = vmatprep.mubr.msk.bf16.mxu1 %vm2909_vm2, %v2907_v21 }
 0x241   : > { %2567 = vmatprep.subr.bf16.mxu1 %v2907_v21 }
 0x2f7   : > { %v823_v1 = vpop.f32.mrf.mxu1 }
 0x2f8   : > { %v878_v4 = vmul.f32 0.25, %v823_v1 }
 0x2f9   : > { %v2541_v5 = vpop.f32.mrf.mxu1 }
 0x2fa   : > { %v880_v6 = vadd.f32 %v878_v4, %v3161_v3 }
 0x2fb   : > { %v826_v7 = vpop.f32.mrf.mxu1 }
 0x2fc   : > { %v883_v8 = vsel %vm882_vm6, %v880_v6, -inf }
 0x2fd   : > { %884 = vmax.xlane.f32.xlu0 %v883_v8  ;;  %v2542_v9 = vpop.f32.mrf.mxu1 }
 0x2ff   : > { %v872_v10 = vpop.f32.mrf.mxu1 }
 0x300   : > { %v879_v11 = vmul.f32 0.25, %v872_v10 }
 0x301   : > { %v2547_v12 = vpop.f32.mrf.mxu1 }
 0x302   : > { %v881_v13 = vadd.f32 %v879_v11, %v3161_v3 }
 0x303   : > { %v875_v14 = vpop.f32.mrf.mxu1 }
 0x304   : > { %v886_v15 = vsel %vm882_vm6, %v881_v13, -inf }
 0x305   : > { %887 = vmax.xlane.f32.xlu1 %v886_v15  ;;  %v2548_v16 = vpop.f32.mrf.mxu1 }
 0x313   : > { %1003 = vrot.lane.b32.xlu0 %v3133_v49, %s2912_s16 }
 0x316   : > { %1001 = vrot.lane.b32.xlu1 %v3133_v49, %s2913_s25 }
 0x386   : > { %v885_v17 = vpop.xlane.xlu0 %884 }
 0x387   : > { %v889_v20 = vsub.f32 %v880_v6, %v885_v17 }
 0x389   : > { %v891_v22 = vmul.f32 1.442695, %v889_v20 }
 0x38a   : > { %v1004_v30 = vpop.permute.xlu0 %1003 }
 0x38b   : > { %2790 = vpow2.f32 %v891_v22  ;;  %v1009_v36 = vsel %vm782_vm4, %v1004_v30, 0 }
 0x38e   : > { %v888_v23 = vpop.xlane.xlu1 %887 }
 0x38f   : > { %v890_v24 = vsub.f32 %v881_v13, %v888_v23 }
 0x391   : > { %v893_v25 = vmul.f32 1.442695, %v890_v24 }
 0x392   : > { %v1002_v41 = vpop.permute.xlu1 %1001 }
 0x393   : > { %2792 = vpow2.f32 %v893_v25 }
 0x398   : > { %v2791_v26 = vpop.eup %2790 }
 0x399   : > { %v895_v27 = vsel %vm882_vm6, %v2791_v26, 0.0 }
 0x39a   : > { %896 = vadd.xlane.f32.xlu0 %v895_v27 }
 0x3a0   : > { %v2793_v28 = vpop.eup %2792 }
 0x3a1   : > { %v898_v29 = vsel %vm882_vm6, %v2793_v28, 0.0 }
 0x3a2   : > { %899 = vadd.xlane.f32.xlu0 %v898_v29 }
 0x3b8   : > { %1053 = vrot.lane.b32.xlu0 %v3138_v53, %s2912_s16 }
 0x3bc   : > { %1051 = vrot.lane.b32.xlu0 %v3138_v53, %s2913_s25 }
 0x423   : > { %v897_v31 = vpop.xlane.xlu0 %896 }
 0x424   : > { %2794 = vrcp.f32 %v897_v31 }
 0x42b   : > { %v900_v32 = vpop.xlane.xlu0 %899 }
 0x42c   : > { %2796 = vrcp.f32 %v900_v32  ;;  %v2782_v32 = vld [vmem:[%s3062_s5] sm:$0xff]  }
 0x42f   : > { %v1054_v39 = vpop.permute.xlu0 %1053 }
 0x430   : > { %v1059_v42 = vsel %vm782_vm4, %v1054_v39, 0 }
 0x431   : > { %v2795_v33 = vpop.eup %2794 }
 0x432   : > { %v902_v34 = vmul.f32 %v2795_v33, %v2791_v26 }
 0x433   : > { %v1052_v43 = vpop.permute.xlu0 %1051 }
 0x434   : > { %v905_v35 = vpack.c.bf16 %v902_v34, %v902_v34 }
 0x436   : > { %2552 = vmatmul.mubr.msk.bf16.vlgmr.msra.gmra.mxu0 %vm882_vm6, %v905_v35 }
 0x437   : > { %2562 = vmatpush3.bf16.xpose.msra.mxu0 %v1009_v36  ;;  %2563 = vmatprep.mubr.msk.bf16.mxu0 %vm2909_vm2, %v2907_v21 }
 0x438   : > { %2573 = vmatprep.subr.bf16.mxu0 %v2907_v21 }
 0x439   : > { %v2797_v37 = vpop.eup %2796 }
 0x43a   : > { %v904_v38 = vmul.f32 %v2797_v37, %v2793_v28  ;;  %v2783_v37 = vld [vmem:[%s3062_s5 + $0x8] sm:$0xff]  }
 0x43c   : > { %v906_v40 = vpack.c.bf16 %v904_v38, %v904_v38 }
 0x43e   : > { %2558 = vmatmul.mubr.msk.bf16.vlgmr.msra.gmra.mxu1 %vm882_vm6, %v906_v40  ;;  %2564 = vmatmul.mubr.msk.bf16.vlgmr.msra.gmra.mxu0 %vm782_vm4, %v1002_v41 }
 0x43f   : > { %2568 = vmatpush3.bf16.xpose.msra.mxu1 %v1059_v42  ;;  %2569 = vmatprep.mubr.msk.bf16.mxu1 %vm2909_vm2, %v2907_v21 }
 0x440   : > { %2579 = vmatprep.subr.bf16.mxu1 %v2907_v21  ;;  %2575 = vmatprep.mubr.msk.bf16.mxu0 %vm2909_vm2, %v2907_v21 }
 0x446   : > { %2570 = vmatmul.mubr.msk.bf16.vlgmr.msra.gmra.mxu1 %vm782_vm4, %v1052_v43 }
 0x447   : > { %2581 = vmatprep.mubr.msk.bf16.mxu1 %vm2909_vm2, %v2907_v21 }
 0x4f6   : > { %v3191_v44 = vpop.f32.mrf.mxu0 }
 0x4f8   : > { %v2553_v45 = vpop.f32.mrf.mxu0 }
 0x4fa   : > { %v951_v46 = vpop.f32.mrf.mxu0 }
 0x4fc   : > { %v2554_v47 = vpop.f32.mrf.mxu0 }
 0x4fe   : > { %v3193_v48 = vpop.f32.mrf.mxu1  ;;  %v1045_v50 = vpop.f32.mrf.mxu0 }
 0x4ff   : > { %v1000_v52 = vpack.c.bf16 %v3193_v48, %v3191_v44  ;;  %v1101_v54 = vmul.f32 0.25, %v1045_v50 }
 0x500   : > { %v2559_v55 = vpop.f32.mrf.mxu1  ;;  %v2565_v56 = vpop.f32.mrf.mxu0 }
 0x501   : > { %v1103_v57 = vadd.f32 %v1101_v54, %v3161_v3 }
 0x502   : > { %v997_v58 = vpop.f32.mrf.mxu1  ;;  %v1048_v59 = vpop.f32.mrf.mxu0 }
 0x503   : > { %v1105_v61 = vsel %vm882_vm6, %v1103_v57, -inf }
 0x504   : > { %1106 = vmax.xlane.f32.xlu0 %v1105_v61  ;;  %v2560_v62 = vpop.f32.mrf.mxu1  ;;  %v2566_v63 = vpop.f32.mrf.mxu0 }
 0x506   : > { %v1095_v0 = vpop.f32.mrf.mxu1 }
 0x507   : > { %v1102_v1 = vmul.f32 0.25, %v1095_v0 }
 0x508   : > { %v2571_v2 = vpop.f32.mrf.mxu1 }
 0x509   : > { %v1104_v4 = vadd.f32 %v1102_v1, %v3161_v3 }
 0x50a   : > { %v1098_v5 = vpop.f32.mrf.mxu1 }
 0x50b   : > { %v1108_v6 = vsel %vm882_vm6, %v1104_v4, -inf }
 0x50c   : > { %1109 = vmax.xlane.f32.xlu1 %v1108_v6  ;;  %v2572_v7 = vpop.f32.mrf.mxu1 }
 0x51d   : > { %1179 = vrot.lane.b32.xlu1 %v3152_v60, %s2913_s25 }
 0x521   : > { %1380 = vrot.lane.b32.xlu1 %v3138_v53, %s2914_s12 }
 0x525   : > { %1378 = vrot.lane.b32.xlu1 %v3138_v53, %s2915_s21 }
 0x58d   : > { %v1107_v8 = vpop.xlane.xlu0 %1106 }
 0x58e   : > { %v1111_v9 = vsub.f32 %v1103_v57, %v1107_v8 }
 0x590   : > { %v1113_v10 = vmul.f32 1.442695, %v1111_v9 }
 0x592   : > { %2798 = vpow2.f32 %v1113_v10 }
 0x595   : > { %v1110_v11 = vpop.xlane.xlu1 %1109 }
 0x596   : > { %v1112_v12 = vsub.f32 %v1104_v4, %v1110_v11 }
 0x598   : > { %v1115_v13 = vmul.f32 1.442695, %v1112_v12 }
 0x599   : > { %v1180_v14 = vpop.permute.xlu1 %1179 }
 0x59a   : > { %2800 = vpow2.f32 %v1115_v13  ;;  %v1185_v15 = vsel %vm910_vm3, %v1180_v14, 0 }
 0x59b   : > { %2580 = vmatpush3.bf16.msra.mxu1 %v1185_v15 }
 0x59c   : > { %2591 = vmatprep.subr.bf16.mxu1 %v2907_v21 }
 0x59d   : > { %v1381_v34 = vpop.permute.xlu1 %1380 }
 0x59e   : > { %v1386_v35 = vsel %vm782_vm4, %v1381_v34, 0 }
 0x59f   : > { %v2799_v16 = vpop.eup %2798 }
 0x5a0   : > { %v1117_v17 = vsel %vm882_vm6, %v2799_v16, 0.0 }
 0x5a1   : > { %1118 = vadd.xlane.f32.xlu0 %v1117_v17  ;;  %v1379_v36 = vpop.permute.xlu1 %1378 }
 0x5a7   : > { %v2801_v20 = vpop.eup %2800 }
 0x5a8   : > { %v1120_v22 = vsel %vm882_vm6, %v2801_v20, 0.0 }
 0x5a9   : > { %1121 = vadd.xlane.f32.xlu0 %v1120_v22 }
 0x5bf   : > { %1130 = vrot.lane.b32.xlu0 %v3135_v51, %s2913_s25 }
 0x5c3   : > { %1330 = vrot.lane.b32.xlu0 %v3133_v49, %s2914_s12 }
 0x5c7   : > { %1328 = vrot.lane.b32.xlu0 %v3133_v49, %s2915_s21 }
 0x62a   : > { %v1119_v23 = vpop.xlane.xlu0 %1118 }
 0x62b   : > { %2802 = vrcp.f32 %v1119_v23 }
 0x632   : > { %v1122_v24 = vpop.xlane.xlu0 %1121 }
 0x633   : > { %2804 = vrcp.f32 %v1122_v24 }
 0x636   : > { %v1131_v25 = vpop.permute.xlu0 %1130 }
 0x637   : > { %v1136_v26 = vsel %vm910_vm3, %v1131_v25, 0 }
 0x638   : > { %v2803_v27 = vpop.eup %2802  ;;  %2574 = vmatpush3.bf16.msra.mxu0 %v1136_v26 }
 0x639   : > { %v1124_v28 = vmul.f32 %v2803_v27, %v2799_v16  ;;  %2585 = vmatprep.subr.bf16.mxu0 %v2907_v21 }
 0x63a   : > { %v1331_v42 = vpop.permute.xlu0 %1330 }
 0x63b   : > { %v1127_v29 = vpack.c.bf16 %v1124_v28, %v1124_v28  ;;  %v1336_v46 = vsel %vm782_vm4, %v1331_v42, 0 }
 0x63d   : > { %2576 = vmatmul.mubr.msk.bf16.vlgmr.msra.gmra.mxu0 %vm882_vm6, %v1127_v29 }
 0x63e   : > { %2587 = vmatprep.mubr.msk.bf16.mxu0 %vm2909_vm2, %v2907_v21  ;;  %2586 = vmatpush3.bf16.msra.mxu0 %v2783_v37 }
 0x63f   : > { %2597 = vmatprep.subr.bf16.mxu0 %v2907_v21 }
 0x640   : > { %v2805_v30 = vpop.eup %2804 }
 0x641   : > { %v1126_v31 = vmul.f32 %v2805_v30, %v2801_v20 }
 0x643   : > { %v1128_v33 = vpack.c.bf16 %v1126_v31, %v1126_v31 }
 0x645   : > { %2582 = vmatmul.mubr.msk.bf16.vlgmr.msra.gmra.mxu1 %vm882_vm6, %v1128_v33 }
 0x646   : > { %2592 = vmatpush3.bf16.msra.mxu1 %v2782_v32  ;;  %2593 = vmatprep.mubr.msk.bf16.mxu1 %vm2909_vm2, %v2907_v21 }
 0x647   : > { %2603 = vmatprep.subr.bf16.mxu1 %v2907_v21 }
 0x64d   : > { %2594 = vmatmul.mubr.msk.bf16.vlgmr.msra.gmra.mxu1 %vm782_vm4, %v1000_v52  ;;  %v1329_v52 = vpop.permute.xlu0 %1328 }
 0x64e   : > { %2604 = vmatpush3.bf16.xpose.msra.mxu1 %v1386_v35  ;;  %2605 = vmatprep.mubr.msk.bf16.mxu1 %vm2909_vm2, %v2907_v21 }
 0x64f   : > { %2615 = vmatprep.subr.bf16.mxu1 %v2907_v21 }
 0x655   : > { %2606 = vmatmul.mubr.msk.bf16.vlgmr.msra.gmra.mxu1 %vm782_vm4, %v1379_v36 }
 0x656   : > { %2617 = vmatprep.mubr.msk.bf16.mxu1 %vm2909_vm2, %v2907_v21 }
 0x6fd   : > { %v1172_v38 = vpop.f32.mrf.mxu0 }
 0x6ff   : > { %v2577_v39 = vpop.f32.mrf.mxu0 }
 0x701   : > { %v1175_v40 = vpop.f32.mrf.mxu0 }
 0x703   : > { %v2578_v41 = vpop.f32.mrf.mxu0 }
 0x705   : > { %v1221_v43 = vpop.f32.mrf.mxu1 }
 0x706   : > { %v1227_v44 = vpack.c.bf16 %v1221_v43, %v1172_v38  ;;  %v2784_v43 = vld [vmem:[%s3062_s5 + $0x10] sm:$0xff]  }
 0x707   : > { %v2583_v45 = vpop.f32.mrf.mxu1 }
 0x708   : > { %2588 = vmatmul.mubr.msk.bf16.vlgmr.msra.gmra.mxu0 %vm782_vm4, %v1227_v44 }
 0x709   : > { %2598 = vmatpush3.bf16.xpose.msra.mxu0 %v1336_v46  ;;  %v1224_v47 = vpop.f32.mrf.mxu1  ;;  %2599 = vmatprep.mubr.msk.bf16.mxu0 %vm2909_vm2, %v2907_v21 }
 0x70a   : > { %2609 = vmatprep.subr.bf16.mxu0 %v2907_v21 }
 0x70b   : > { %v2584_v48 = vpop.f32.mrf.mxu1 }
 0x70d   : > { %v3243_v50 = vpop.f32.mrf.mxu1 }
 0x70f   : > { %v2595_v54 = vpop.f32.mrf.mxu1 }
 0x710   : > { %2600 = vmatmul.mubr.msk.bf16.vlgmr.msra.gmra.mxu0 %vm782_vm4, %v1329_v52 }
 0x711   : > { %v3246_v55 = vpop.f32.mrf.mxu1  ;;  %2611 = vmatprep.mubr.msk.bf16.mxu0 %vm2909_vm2, %v2907_v21 }
 0x713   : > { %v2596_v56 = vpop.f32.mrf.mxu1 }
 0x715   : > { %v1422_v57 = vpop.f32.mrf.mxu1 }
 0x716   : > { %v1429_v58 = vmul.f32 0.25, %v1422_v57 }
 0x717   : > { %v2607_v59 = vpop.f32.mrf.mxu1 }
 0x718   : > { %v1431_v61 = vadd.f32 %v1429_v58, %v3161_v3 }
 0x719   : > { %v1425_v62 = vpop.f32.mrf.mxu1 }
 0x71a   : > { %v1435_v63 = vsel %vm882_vm6, %v1431_v61, -inf }
 0x71b   : > { %1436 = vmax.xlane.f32.xlu1 %v1435_v63  ;;  %v2608_v0 = vpop.f32.mrf.mxu1 }
 0x72c   : > { %1504 = vrot.lane.b32.xlu1 %v3152_v60, %s2915_s21 }
 0x730   : > { %1607 = vrot.lane.b32.xlu1 %v3133_v49, %s2916_s15 }
 0x734   : > { %1657 = vrot.lane.b32.xlu1 %v3138_v53, %s2916_s15 }
 0x738   : > { %1655 = vrot.lane.b32.xlu1 %v3138_v53, %s2917_s18 }
 0x7a4   : > { %v1437_v1 = vpop.xlane.xlu1 %1436 }
 0x7a5   : > { %v1439_v5 = vsub.f32 %v1431_v61, %v1437_v1 }
 0x7a7   : > { %v1442_v6 = vmul.f32 1.442695, %v1439_v5 }
 0x7a8   : > { %v1505_v2 = vpop.permute.xlu1 %1504 }
 0x7a9   : > { %v1510_v4 = vsel %vm910_vm3, %v1505_v2, 0  ;;  %2806 = vpow2.f32 %v1442_v6 }
 0x7aa   : > { %2616 = vmatpush3.bf16.msra.mxu1 %v1510_v4 }
 0x7ab   : > { %2627 = vmatprep.subr.bf16.mxu1 %v2907_v21 }
 0x7ac   : > { %v1608_v30 = vpop.permute.xlu1 %1607 }
 0x7ad   : > { %v1613_v32 = vsel %vm782_vm4, %v1608_v30, 0 }
 0x7b0   : > { %v1658_v56 = vpop.permute.xlu1 %1657 }
 0x7b1   : > { %v1663_v61 = vsel %vm782_vm4, %v1658_v56, 0 }
 0x7b4   : > { %v1656_v0 = vpop.permute.xlu1 %1655 }
 0x7b6   : > { %v2807_v16 = vpop.eup %2806 }
 0x7b7   : > { %v1447_v20 = vsel %vm882_vm6, %v2807_v16, 0.0 }
 0x7c8   : > { %v3260_v7 = vpop.f32.mrf.mxu0 }
 0x7ca   : > { %v2589_v8 = vpop.f32.mrf.mxu0 }
 0x7cb   : > { %v1322_v8 = vadd.f32 %v3243_v50, %v3260_v7 }
 0x7cc   : > { %v3262_v9 = vpop.f32.mrf.mxu0 }
 0x7ce   : > { %v2590_v10 = vpop.f32.mrf.mxu0 }
 0x7d0   : > { %v1372_v11 = vpop.f32.mrf.mxu0 }
 0x7d1   : > { %v1428_v12 = vmul.f32 0.25, %v1372_v11 }
 0x7d2   : > { %v2601_v13 = vpop.f32.mrf.mxu0 }
 0x7d3   : > { %v1430_v53 = vadd.f32 %v1428_v12, %v3161_v3  ;;  %v1325_v13 = vadd.f32 %v3246_v55, %v3262_v9 }
 0x7d4   : > { %v1375_v14 = vpop.f32.mrf.mxu0 }
 0x7d5   : > { %v1432_v15 = vsel %vm882_vm6, %v1430_v53, -inf }
 0x7d6   : > { %1433 = vmax.xlane.f32.xlu0 %v1432_v15  ;;  %v2602_v17 = vpop.f32.mrf.mxu0 }
 0x7da   : > { %1448 = vadd.xlane.f32.xlu0 %v1447_v20 }
 0x85f   : > { %v1434_v22 = vpop.xlane.xlu0 %1433 }
 0x860   : > { %v1438_v23 = vsub.f32 %v1430_v53, %v1434_v22 }
 0x862   : > { %v1440_v24 = vmul.f32 1.442695, %v1438_v23 }
 0x863   : > { %v1449_v25 = vpop.xlane.xlu0 %1448 }
 0x864   : > { %2808 = vpow2.f32 %v1440_v24 }
 0x865   : > { %2810 = vrcp.f32 %v1449_v25 }
 0x871   : > { %v2809_v26 = vpop.eup %2808 }
 0x872   : > { %v2811_v27 = vpop.eup %2810  ;;  %v1444_v28 = vsel %vm882_vm6, %v2809_v26, 0.0 }
 0x873   : > { %1445 = vadd.xlane.f32.xlu0 %v1444_v28  ;;  %v1453_v29 = vmul.f32 %v2811_v27, %v2807_v16 }
 0x875   : > { %v1455_v31 = vpack.c.bf16 %v1453_v29, %v1453_v29 }
 0x877   : > { %2618 = vmatmul.mubr.msk.bf16.vlgmr.msra.gmra.mxu1 %vm882_vm6, %v1455_v31 }
 0x878   : > { %2628 = vmatpush3.bf16.xpose.msra.mxu1 %v1613_v32  ;;  %2629 = vmatprep.mubr.msk.bf16.mxu1 %vm2909_vm2, %v2907_v21 }
 0x879   : > { %2639 = vmatprep.subr.bf16.mxu1 %v2907_v21 }
 0x889   : > { %1456 = vrot.lane.b32.xlu0 %v3135_v51, %s2915_s21 }
 0x88d   : > { %1605 = vrot.lane.b32.xlu0 %v3133_v49, %s2917_s18 }
 0x8fc   : > { %v1446_v33 = vpop.xlane.xlu0 %1445 }
 0x8fd   : > { %2812 = vrcp.f32 %v1446_v33 }
 0x900   : > { %v1457_v34 = vpop.permute.xlu0 %1456 }
 0x901   : > { %v1462_v35 = vsel %vm910_vm3, %v1457_v34, 0 }
 0x902   : > { %2610 = vmatpush3.bf16.msra.mxu0 %v1462_v35 }
 0x903   : > { %2621 = vmatprep.subr.bf16.mxu0 %v2907_v21 }
 0x904   : > { %v1606_v36 = vpop.permute.xlu0 %1605 }
 0x905   : > { %2630 = vmatmul.mubr.msk.bf16.vlgmr.msra.gmra.mxu1 %vm782_vm4, %v1606_v36  ;;  %v2785_v36 = vld [vmem:[%s3062_s5 + $0x18] sm:$0xff]  }
 0x906   : > { %2641 = vmatprep.mubr.msk.bf16.mxu1 %vm2909_vm2, %v2907_v21 }
 0x90a   : > { %v2813_v37 = vpop.eup %2812 }
 0x90b   : > { %v1451_v38 = vmul.f32 %v2813_v37, %v2809_v26 }
 0x90d   : > { %v1454_v39 = vpack.c.bf16 %v1451_v38, %v1451_v38 }
 0x90f   : > { %2612 = vmatmul.mubr.msk.bf16.vlgmr.msra.gmra.mxu0 %vm882_vm6, %v1454_v39 }
 0x910   : > { %2623 = vmatprep.mubr.msk.bf16.mxu0 %vm2909_vm2, %v2907_v21  ;;  %2622 = vmatpush3.bf16.msra.mxu0 %v2784_v43 }
 0x911   : > { %2633 = vmatprep.subr.bf16.mxu0 %v2907_v21 }
 0x937   : > { %v1546_v49 = vpop.f32.mrf.mxu1 }
 0x939   : > { %v2619_v40 = vpop.f32.mrf.mxu1 }
 0x93b   : > { %v1549_v41 = vpop.f32.mrf.mxu1 }
 0x93d   : > { %v2620_v42 = vpop.f32.mrf.mxu1 }
 0x9c5   : > { %v1649_v44 = vpop.f32.mrf.mxu1 }
 0x9c6   : > { %v1705_v45 = vmul.f32 0.25, %v1649_v44 }
 0x9c7   : > { %v2631_v46 = vpop.f32.mrf.mxu1 }
 0x9c8   : > { %v1707_v47 = vadd.f32 %v1705_v45, %v3161_v3 }
 0x9c9   : > { %v1652_v48 = vpop.f32.mrf.mxu1 }
 0x9ca   : > { %v1709_v52 = vsel %vm882_vm6, %v1707_v47, -inf }
 0x9cb   : > { %1710 = vmax.xlane.f32.xlu0 %v1709_v52  ;;  %v2632_v54 = vpop.f32.mrf.mxu1 }
 0x9cf   : > { %v1498_v57 = vpop.f32.mrf.mxu0 }
 0x9d0   : > { %v1552_v58 = vpack.c.bf16 %v1546_v49, %v1498_v57 }
 0x9d1   : > { %v2613_v59 = vpop.f32.mrf.mxu0 }
 0x9d2   : > { %2624 = vmatmul.mubr.msk.bf16.vlgmr.msra.gmra.mxu0 %vm782_vm4, %v1552_v58 }
 0x9d3   : > { %2634 = vmatpush3.bf16.xpose.msra.mxu0 %v1663_v61  ;;  %v1501_v62 = vpop.f32.mrf.mxu0  ;;  %2635 = vmatprep.mubr.msk.bf16.mxu0 %vm2909_vm2, %v2907_v21 }
 0x9d4   : > { %2645 = vmatprep.subr.bf16.mxu0 %v2907_v21 }
 0x9d5   : > { %v2614_v63 = vpop.f32.mrf.mxu0 }
 0x9da   : > { %2636 = vmatmul.mubr.msk.bf16.vlgmr.msra.gmra.mxu0 %vm782_vm4, %v1656_v0 }
 0x9db   : > { %2647 = vmatprep.mubr.msk.bf16.mxu0 %vm2909_vm2, %v2907_v21 }
 0xa54   : > { %v1711_v1 = vpop.xlane.xlu0 %1710 }
 0xa55   : > { %v1715_v2 = vsub.f32 %v1707_v47, %v1711_v1 }
 0xa57   : > { %v1717_v4 = vmul.f32 1.442695, %v1715_v2 }
 0xa59   : > { %2814 = vpow2.f32 %v1717_v4  ;;  %v2447_v4 = vld [vmem:[%s605_s30] ss:$0 sm:$0xff] }
 0xa66   : > { %v2815_v5 = vpop.eup %2814 }
 0xa67   : > { %v1721_v6 = vsel %vm882_vm6, %v2815_v5, 0.0 }
 0xa68   : > { %1722 = vadd.xlane.f32.xlu0 %v1721_v6 }
 0xa92   : > { %v1596_v10 = vpop.f32.mrf.mxu0 }
 0xa93   : > { %v1603_v11 = vadd.f32 %v1596_v10, %v1322_v8 }
 0xa94   : > { %v2625_v12 = vpop.f32.mrf.mxu0 }
 0xa96   : > { %v1599_v53 = vpop.f32.mrf.mxu0 }
 0xa97   : > { %v1604_v14 = vadd.f32 %v1599_v53, %v1325_v13 }
 0xa98   : > { %v2626_v15 = vpop.f32.mrf.mxu0 }
 0xa9a   : > { %v1699_v16 = vpop.f32.mrf.mxu0 }
 0xa9b   : > { %v1706_v17 = vmul.f32 0.25, %v1699_v16 }
 0xa9c   : > { %v2637_v20 = vpop.f32.mrf.mxu0 }
 0xa9d   : > { %v1708_v22 = vadd.f32 %v1706_v17, %v3161_v3 }
 0xa9e   : > { %v1702_v23 = vpop.f32.mrf.mxu0 }
 0xa9f   : > { %v1712_v24 = vsel %vm882_vm6, %v1708_v22, -inf }
 0xaa0   : > { %1713 = vmax.xlane.f32.xlu1 %v1712_v24  ;;  %v2638_v25 = vpop.f32.mrf.mxu0 }
 0xab1   : > { %1781 = vrot.lane.b32.xlu1 %v3152_v60, %s2917_s18 }
 0xaf1   : > { %v1723_v3 = vpop.xlane.xlu0 %1722 }
 0xb29   : > { %v1714_v50 = vpop.xlane.xlu1 %1713 }
 0xb2a   : > { %v1716_v7 = vsub.f32 %v1708_v22, %v1714_v50 }
 0xb2c   : > { %v1719_v26 = vmul.f32 1.442695, %v1716_v7 }
 0xb2d   : > { %v1782_v55 = vpop.permute.xlu1 %1781 }
 0xb2e   : > { %2816 = vpow2.f32 %v1719_v26  ;;  %v1787_v9 = vsel %vm910_vm3, %v1782_v55, 0 }
 0xb2f   : > { %2646 = vmatpush3.bf16.msra.mxu0 %v1787_v9  ;;  %2818 = vrcp.f32 %v1723_v3 }
 0xb3b   : > { %v2817_v27 = vpop.eup %2816 }
 0xb3c   : > { %v1724_v28 = vsel %vm882_vm6, %v2817_v27, 0.0  ;;  %v2819_v29 = vpop.eup %2818 }
 0xb3d   : > { %1725 = vadd.xlane.f32.xlu0 %v1724_v28  ;;  %v1728_v30 = vmul.f32 %v2819_v29, %v2815_v5 }
 0xb3f   : > { %v1731_v33 = vpack.c.bf16 %v1728_v30, %v1728_v30 }
 0xb53   : > { %1733 = vrot.lane.b32.xlu0 %v3135_v51, %s2917_s18 }
 0xbc6   : > { %v1726_v60 = vpop.xlane.xlu0 %1725 }
 0xbc7   : > { %2820 = vrcp.f32 %v1726_v60 }
 0xbca   : > { %v1734_v31 = vpop.permute.xlu0 %1733 }
 0xbcb   : > { %v1739_v32 = vsel %vm910_vm3, %v1734_v31, 0 }
 0xbcc   : > { %2640 = vmatpush3.bf16.msra.mxu1 %v1739_v32 }
 0xbcd   : > { %2651 = vmatprep.subr.bf16.mxu1 %v2907_v21 }
 0xbcf   : > { %2642 = vmatmul.mubr.msk.bf16.vlgmr.msra.gmra.mxu1 %vm882_vm6, %v1731_v33 }
 0xbd0   : > { %2653 = vmatprep.mubr.msk.bf16.mxu1 %vm2909_vm2, %v2907_v21  ;;  %2652 = vmatpush3.bf16.msra.mxu1 %v2785_v36 }
 0xbd4   : > { %v2821_v51 = vpop.eup %2820 }
 0xbd5   : > { %v1730_v34 = vmul.f32 %v2821_v51, %v2817_v27 }
 0xbd7   : > { %v1732_v35 = vpack.c.bf16 %v1730_v34, %v1730_v34 }
 0xbd9   : > { %2648 = vmatmul.mubr.msk.bf16.vlgmr.msra.gmra.mxu0 %vm882_vm6, %v1732_v35 }
 0xc8f   : > { %v1775_v37 = vpop.f32.mrf.mxu1 }
 0xc91   : > { %v2643_v38 = vpop.f32.mrf.mxu1 }
 0xc93   : > { %v1778_v39 = vpop.f32.mrf.mxu1 }
 0xc95   : > { %v2644_v49 = vpop.f32.mrf.mxu1 }
 0xc99   : > { %v1823_v40 = vpop.f32.mrf.mxu0 }
 0xc9a   : > { %v1829_v41 = vpack.c.bf16 %v1823_v40, %v1775_v37 }
 0xc9b   : > { %v2649_v42 = vpop.f32.mrf.mxu0 }
 0xc9c   : > { %2654 = vmatmul.mubr.msk.bf16.vlgmr.msra.gmra.mxu1 %vm782_vm4, %v1829_v41 }
 0xc9d   : > { %v1826_v43 = vpop.f32.mrf.mxu0 }
 0xc9f   : > { %v2650_v44 = vpop.f32.mrf.mxu0 }
 0xd5c   : > { %v1873_v45 = vpop.f32.mrf.mxu1 }
 0xd5d   : > { %v1880_v21 = vadd.f32 %v1873_v45, %v1603_v11 }
 0xd5e   : > { %v2655_v46 = vpop.f32.mrf.mxu1 }
 0xd5f   : > { %v1882_v47 = vadd.f32 %v1880_v21, %v3094_v18 }
 0xd60   : > { %v1876_v48 = vpop.f32.mrf.mxu1 }
 0xd61   : > { %1884 = vst.msk [vmem:[%s3402_s8] sm:$0xff] %vm642_vm1, %v1882_v47  ;;  %v1881_v52 = vadd.f32 %v1876_v48, %v1604_v14  ;;  %v1887_v54 = vmul.f32 %v1882_v47, %v1882_v47 }
 0xd62   : > { %v2656_v56 = vpop.f32.mrf.mxu1 }
 0xd63   : > { %v1883_v57 = vadd.f32 %v1881_v52, %v3099_v19  ;;  %v1889_v58 = vsel %vm642_vm1, %v1887_v54, 0.0 }
 0xd64   : > { %1890 = vadd.xlane.f32.xlu1 %v1889_v58 }
 0xd65   : > { %1885 = vst.msk [vmem:[%s3402_s8 + $0x8] sm:$0xff] %vm642_vm1, %v1883_v57  ;;  %v1888_v18 = vmul.f32 %v1883_v57, %v1883_v57 }
 0xd67   : > { %v1892_v59 = vsel %vm642_vm1, %v1888_v18, 0.0 }
 0xd68   : > { %1893 = vadd.xlane.f32.xlu0 %v1892_v59 }
 0xded   : > { %v1891_v61 = vpop.xlane.xlu1 %1890 }
 0xdee   : > { %v1895_v62 = vmul.f32 0.015625, %v1891_v61 }
 0xdf0   : > { %v1897_v63 = vadd.f32 1e-05, %v1895_v62 }
 0xdf1   : > { %v1894_v0 = vpop.xlane.xlu0 %1893 }
 0xdf2   : > { %2822 = vrsqrt.f32 %v1897_v63  ;;  %v1896_v1 = vmul.f32 0.015625, %v1894_v0 }
 0xdf4   : > { %v1898_v19 = vadd.f32 1e-05, %v1896_v1 }
 0xdf6   : > { %2824 = vrsqrt.f32 %v1898_v19 }
 0xdff   : > { %v2823_v2 = vpop.eup %2822 }
 0xe00   : > { %v1901_v5 = vmul.f32 %v2823_v2, %v1882_v47 }
 0xe02   : > { %v1909_v6 = vmul.f32 %v2447_v4, %v1901_v5 }
 0xe03   : > { %v2825_v8 = vpop.eup %2824 }
 0xe04   : > { %v2476_v10 = vpack.c.bf16 %v1909_v6, %v1909_v6  ;;  %v1902_v11 = vmul.f32 %v2825_v8, %v1883_v57 }
 0xe06   : > { %1920 = vst.msk [vmem:[#allocation2] sm:$0xf] %vm1919_vm7, %v2476_v10  ;;  %v1910_v12 = vmul.f32 %v2447_v4, %v1902_v11 }
 0xe08   : > { %v2477_v13 = vpack.c.bf16 %v1910_v12, %v1910_v12 }
 0xe0a   : > { %1921 = vst.msk [vmem:[#allocation2 + $0x4] sm:$0xf] %vm1919_vm7, %v2477_v13 }
 0xe0b PF: > { %v2826_v53 = vld [vmem:[%s3074_s23 + $0x18] sm:$0xff]   ;;  %v2918_v14 = vmov 0.0   ;;  %v2827_v15 = vld [vmem:[%s3074_s23 + $0x10] sm:$0xff]   ;;  %vm2919_vm8 = vmmov 0   ;;  %v2828_v16 = vld [vmem:[%s3074_s23 + $0x8] sm:$0xff]   ;;  %vm1963_vm9 = vcmask 523264  }
 0xe0c   : > { %2657 = vmatprep.subr.bf16.mxu1 %v2918_v14  ;;  %2681 = vmatprep.subr.bf16.mxu0 %v2918_v14  ;;  %v2829_v17 = vld [vmem:[%s3074_s23] sm:$0xff]   ;;  %v2831_v22 = vld [vmem:[%s3076_s24 + $0x18] sm:$0xff]   ;;  %v2832_v23 = vld [vmem:[%s3076_s24 + $0x10] sm:$0xff]   ;;  %p2469_p2 = scmp.ne.s32.totalorder %s2889_s29, 1 }
 0xe0d   : > { %2658 = vmatpush3.bf16.msra.mxu1 %v2826_v53  ;;  %2665 = vmatprep.mubr.msk.bf16.mxu1 %vm2919_vm8, %v2918_v14  ;;  %v2833_v24 = vld [vmem:[%s3076_s24 + $0x8] sm:$0xff]   ;;  %v2834_v25 = vld [vmem:[%s3076_s24] sm:$0xff]   ;;  %v2836_v7 = vld [vmem:[%s3072_s22 + $0x30] sm:$0xff]  }
 0xe0e   : > { %2659 = vmatprep.subr.bf16.mxu1 %v2918_v14  ;;  %2697 = vmatprep.mubr.msk.bf16.mxu0 %vm2919_vm8, %v2918_v14  ;;  %v2835_v50 = vld [vmem:[%s3072_s22 + $0x38] sm:$0xff]   ;;  %v2837_v26 = vld [vmem:[%s3072_s22 + $0x28] sm:$0xff]   ;;  %v2838_v55 = vld [vmem:[%s3072_s22 + $0x20] sm:$0xff]  }
 0xe0f   : > { %2682 = vmatpush3.bf16.msra.mxu0 %v2835_v50  ;;  %v2839_v9 = vld [vmem:[%s3072_s22 + $0x18] sm:$0xff]   ;;  %v2840_v27 = vld [vmem:[%s3072_s22 + $0x10] sm:$0xff]   ;;  %v2841_v28 = vld [vmem:[%s3072_s22 + $0x8] sm:$0xff]  }
 0xe10   : > { %2683 = vmatprep.subr.bf16.mxu0 %v2918_v14  ;;  %v2842_v3 = vld [vmem:[%s3072_s22] sm:$0xff]   ;;  %v2095_v48 = vld [vmem:[#allocation3] sm:$0xff]  ;;  %v2096_v57 = vld [vmem:[#allocation3 + $0x8] sm:$0xff] }
 0xe11   : > { %2660 = vmatpush3.bf16.msra.mxu1 %v2827_v15  ;;  %v2830_v20 = vld [vmem:[#allocation2] sm:$0xff]  }
 0xe12   : > { %2661 = vmatprep.subr.bf16.mxu1 %v2918_v14 }
 0xe13   : > { %2684 = vmatpush3.bf16.msra.mxu0 %v2836_v7 }
 0xe14   : > { %2685 = vmatprep.subr.bf16.mxu0 %v2918_v14 }
 0xe15   : > { %2662 = vmatpush3.bf16.msra.mxu1 %v2828_v16 }
 0xe16   : > { %2663 = vmatprep.subr.bf16.mxu1 %v2918_v14 }
 0xe17   : > { %2686 = vmatpush3.bf16.msra.mxu0 %v2837_v26 }
 0xe18   : > { %2687 = vmatprep.subr.bf16.mxu0 %v2918_v14 }
 0xe19   : > { %2664 = vmatpush3.bf16.msra.mxu1 %v2829_v17 }
 0xe1a   : > { %2669 = vmatprep.subr.bf16.mxu1 %v2918_v14 }
 0xe1b   : > { %2688 = vmatpush3.bf16.msra.mxu0 %v2838_v55 }
 0xe1c   : > { %2666 = vmatmul.mubr.msk.bf16.vlgmr.msra.gmra.mxu1 %vm1963_vm9, %v2830_v20  ;;  %2689 = vmatprep.subr.bf16.mxu0 %v2918_v14 }
 0xe1d   : > { %2670 = vmatpush3.bf16.msra.mxu1 %v2831_v22  ;;  %2677 = vmatprep.mubr.msk.bf16.mxu1 %vm2919_vm8, %v2918_v14 }
 0xe1e   : > { %2671 = vmatprep.subr.bf16.mxu1 %v2918_v14 }
 0xe1f   : > { %2690 = vmatpush3.bf16.msra.mxu0 %v2839_v9 }
 0xe20   : > { %2691 = vmatprep.subr.bf16.mxu0 %v2918_v14 }
 0xe21   : > { %2672 = vmatpush3.bf16.msra.mxu1 %v2832_v23 }
 0xe22   : > { %2673 = vmatprep.subr.bf16.mxu1 %v2918_v14 }
 0xe23   : > { %2692 = vmatpush3.bf16.msra.mxu0 %v2840_v27 }
 0xe24   : > { %2693 = vmatprep.subr.bf16.mxu0 %v2918_v14 }
 0xe25   : > { %2674 = vmatpush3.bf16.msra.mxu1 %v2833_v24 }
 0xe26   : > { %2675 = vmatprep.subr.bf16.mxu1 %v2918_v14 }
 0xe27   : > { %2694 = vmatpush3.bf16.msra.mxu0 %v2841_v28 }
 0xe28   : > { %2695 = vmatprep.subr.bf16.mxu0 %v2918_v14 }
 0xe29   : > { %2676 = vmatpush3.bf16.msra.mxu1 %v2834_v25 }
 0xe2b   : > { %2696 = vmatpush3.bf16.msra.mxu0 %v2842_v3 }
 0xe2c   : > { %2678 = vmatmul.mubr.msk.bf16.vlgmr.msra.gmra.mxu1 %vm1963_vm9, %v2830_v20 }
 0xedc   : > { %v2001_v29 = vpop.f32.mrf.mxu1 }
 0xedd   : > { %v2081_v60 = vsub.f32 0.0, %v2001_v29 }
 0xede   : > { %v2667_v30 = vpop.f32.mrf.mxu1 }
 0xedf   : > { %v2083_v31 = vmul.f32 1.442695, %v2081_v60 }
 0xee0   : > { %v2004_v32 = vpop.f32.mrf.mxu1 }
 0xee1   : > { %2843 = vpow2.f32 %v2083_v31  ;;  %v2082_v33 = vsub.f32 0.0, %v2004_v32 }
 0xee2   : > { %v2668_v51 = vpop.f32.mrf.mxu1 }
 0xee3   : > { %v2085_v34 = vmul.f32 1.442695, %v2082_v33 }
 0xee5   : > { %2845 = vpow2.f32 %v2085_v34 }
 0xeec   : > { %v2074_v35 = vpop.f32.mrf.mxu1 }
 0xeee   : > { %v2844_v36 = vpop.eup %2843  ;;  %v2679_v37 = vpop.f32.mrf.mxu1 }
 0xeef   : > { %v2087_v38 = vadd.f32 1.0, %v2844_v36 }
 0xef0   : > { %v2077_v39 = vpop.f32.mrf.mxu1 }
 0xef1   : > { %2847 = vrcp.f32 %v2087_v38 }
 0xef2   : > { %v2846_v49 = vpop.eup %2845  ;;  %v2680_v40 = vpop.f32.mrf.mxu1 }
 0xef3   : > { %v2088_v41 = vadd.f32 1.0, %v2846_v49 }
 0xef5   : > { %2849 = vrcp.f32 %v2088_v41 }
 0xefe   : > { %v2848_v42 = vpop.eup %2847 }
 0xeff   : > { %v2093_v43 = vmul.f32 %v2848_v42, %v2001_v29 }
 0xf01   : > { %v2097_v21 = vmul.f32 %v2093_v43, %v2074_v35 }
 0xf02   : > { %v2850_v44 = vpop.eup %2849 }
 0xf03   : > { %v2094_v45 = vmul.f32 %v2850_v44, %v2004_v32 }
 0xf05   : > { %v2098_v46 = vmul.f32 %v2094_v45, %v2077_v39 }
 0xf07   : > { %v2099_v47 = vpack.c.bf16 %v2098_v46, %v2097_v21 }
 0xf09   : > { %2698 = vmatmul.mubr.bf16.vlgmr.msra.gmra.mxu0 %v2099_v47 }
 0xfc9   : > { %v2198_v52 = vpop.f32.mrf.mxu0 }
 0xfca   : > { %v2205_v54 = vadd.f32 %v2198_v52, %v2095_v48 }
 0xfcb   : > { %v2699_v56 = vpop.f32.mrf.mxu0 }
 0xfcc   : > { %2207 = vst.msk [vmem:[#allocation3] sm:$0xff] %vm1963_vm9, %v2205_v54  ;;  %2212 = sbr.rel (%p2469_p2) target bundleno = 4059 (0xfdb), region = 146 }
 0xfcd   : > { %v2201_v58 = vpop.f32.mrf.mxu0 }
 0xfce   : > { %v2206_v18 = vadd.f32 %v2201_v58, %v2096_v57 }
 0xfcf   : > { %v2700_v59 = vpop.f32.mrf.mxu0 }
 0xfd0   : > { %2208 = vst.msk [vmem:[#allocation3 + $0x8] sm:$0xff] %vm1963_vm9, %v2206_v18 }
 0xfd1   : > { %v2213_v61 = vld [vmem:[%s3402_s8] sm:$0xff]  ;;  %v2214_v63 = vld [vmem:[%s3402_s8 + $0x8] sm:$0xff] }
 0xfd3   : > { %v2215_v62 = vld [vmem:[#allocation3] sm:$0xff] }
 0xfd4   : > { %v2217_v0 = vadd.f32 %v2215_v62, %v2213_v61 }
 0xfd6   : > { %2219 = vst.msk [vmem:[%s3402_s8] sm:$0xff] %vm1963_vm9, %v2217_v0 }
 0xfd7   : > { %v2216_v1 = vld [vmem:[#allocation3 + $0x8] sm:$0xff] }
 0xfd8   : > { %v2218_v19 = vadd.f32 %v2216_v1, %v2214_v63 }
 0xfda   : > { %2220 = vst.msk [vmem:[%s3402_s8 + $0x8] sm:$0xff] %vm1963_vm9, %v2218_v19 }
 0xfdb PF: > { %s18_s11 = sadd.s32 1, %s2905_s11   ;;  %s3413_s25 = sld [smem:[#allocation6_spill]] }
 0xfdc   : > { %p15_p3 = scmp.ge.s32.totalorder %s18_s11, 6   ;;  %s3414_s12 = sld [smem:[#allocation7_spill]] }
 0xfdd   : > { %s3415_s27 = smov %s2885_s28  ;;  %s3416_s28 = smov %s3020_s19 }
 0xfde   : > { %s3417_s29 = smov %s2897_s9  ;;  %s3418_s30 = smov %s2901_s10 }
 0xfdf   :  { %17 = sbr.rel (!%p15_p3) target bundleno = 7 (0x7), region = 207 }
 0xfe1   : > { %s3419_s9 = smov %s3413_s25 }
 0xfe2   : > { %s3420_s10 = smov %s3414_s12 }

</bundles_post_ra>
